<compile_context>
chip_gen: v5e
topology: v5e:2x2
jax: 0.10.0
libtpu: 0.0.40
codegen_flags: <defaults>
</compile_context>

<pallas_src>
import functools
import math

import jax
import jax.numpy as jnp
import numpy as np
from jax.experimental import pallas as pl
from jax.experimental.pallas import tpu as pltpu


# ----------------------------------------------------------------------------
# In-kernel helpers (2-D matmuls / elementwise on VMEM-resident values)
# ----------------------------------------------------------------------------
def _maxpool(h, rsel_ref, csel_ref):
    """2x2 / stride-2 max pool on an (H, W*ch) activation via host-prepared
    selection matrices: rsel (2, hout, hin), csel (2, win*ch, wout*ch)."""
    rmax = jnp.maximum(
        jnp.dot(rsel_ref[0], h, preferred_element_type=jnp.float32),
        jnp.dot(rsel_ref[1], h, preferred_element_type=jnp.float32))
    return jnp.maximum(
        jnp.dot(rmax, csel_ref[0], preferred_element_type=jnp.float32),
        jnp.dot(rmax, csel_ref[1], preferred_element_type=jnp.float32))


def _conv_relu(h, ph_ref, a_ref, b_ref):
    """ReplicationPad2d(2) + Conv2d(k) + ReLU on an (H, W*Cin) activation:
    conv(x)[i, j*Cout+co] = sum_dy (PH[dy] @ x @ A[dy])[i, j*Cout+co] + b[co]."""
    k = ph_ref.shape[0]
    acc = None
    for dy in range(k):
        t = jnp.dot(ph_ref[dy], h, preferred_element_type=jnp.float32)
        t = jnp.dot(t, a_ref[dy], preferred_element_type=jnp.float32)
        acc = t if acc is None else acc + t
    return jnp.maximum(acc + b_ref[...], 0.0)


# ----------------------------------------------------------------------------
# The fused kernel: loc-net + affine_grid + grid_sample for a block of B images
# ----------------------------------------------------------------------------
def _stn_kernel(x2_ref, ximg_ref,
                rs0_ref, cs0_ref, rs1_ref, cs1_ref, rs2_ref, cs2_ref, rs3_ref, cs3_ref,
                ph1_ref, a1_ref, b1_ref,
                ph2_ref, a2_ref, b2_ref,
                ph3_ref, a3_ref, b3_ref,
                wfc_ref, bfc_ref, wcls_ref, bcls_ref,
                bgrid_ref, xs_ref, ys_ref, rsum_ref,
                out_ref, *, B, H, W, C):
    fW, fH = float(W), float(H)

    # Constants shared by every image in the block (loaded once per grid step).
    bg = bgrid_ref[...]                       # (2, P): [base_x; base_y]
    bx = bg[0:1, :]
    by = bg[1:2, :]
    xs_v = xs_ref[...]                        # (W, 1)   int32 column index
    ys_v = ys_ref[...]                        # (C*H, 1) int32: row % H
    rsum_v = rsum_ref[...]                    # (C, C*H) per-channel row-sum matrix
    bfc_v = bfc_ref[...]
    wcls_v = wcls_ref[...]
    bcls_v = bcls_ref[...]

    for b in range(B):                        # B is a small static constant
        # ----- localization network (everything stays in VMEM) -----
        h = _maxpool(x2_ref[b], rs0_ref, cs0_ref)         # (H/2,   W/2*C)
        h = _conv_relu(h, ph1_ref, a1_ref, b1_ref)        # (H/2,   W/2*c1)
        h = _maxpool(h, rs1_ref, cs1_ref)                 # (H/4,   W/4*c1)
        h = _conv_relu(h, ph2_ref, a2_ref, b2_ref)        # (H/4,   W/4*c2)
        h = _maxpool(h, rs2_ref, cs2_ref)                 # (H/8,   W/8*c2)
        h = _conv_relu(h, ph3_ref, a3_ref, b3_ref)        # (H/8+2, (W/8+2)*c3)
        h = _maxpool(h, rs3_ref, cs3_ref)                 # (s,     sw*c3)

        # fc (+ReLU) on the flattened feature; s is tiny (2 at 16x16), so the
        # per-row loop is just a couple of (1, sw*c3) @ (sw*c3, p3) matmuls.
        f = bfc_v
        for r in range(h.shape[0]):
            f = f + jnp.dot(h[r:r + 1, :], wfc_ref[r],
                            preferred_element_type=jnp.float32)
        f = jnp.maximum(f, 0.0)
        theta = jnp.dot(f, wcls_v, preferred_element_type=jnp.float32) + bcls_v

        # ----- affine_grid + grid_sample (bilinear, zeros pad, align_corners=False)
        t00, t01, t02 = theta[:, 0:1], theta[:, 1:2], theta[:, 2:3]
        t10, t11, t12 = theta[:, 3:4], theta[:, 4:5], theta[:, 5:6]
        gx = t00 * bx + t01 * by + t02                    # (1, P)
        gy = t10 * bx + t11 * by + t12
        ix = ((gx + 1.0) * fW - 1.0) * 0.5
        iy = ((gy + 1.0) * fH - 1.0) * 0.5

        x0 = jnp.floor(ix)
        y0 = jnp.floor(iy)
        x1 = x0 + 1.0
        y1 = y0 + 1.0
        wx1 = ix - x0
        wx0 = 1.0 - wx1
        wy1 = iy - y0
        wy0 = 1.0 - wy1

        def axis_weight(coord, wgt, lim):
            valid = (coord >= 0.0) & (coord <= lim - 1.0)
            wm = jnp.where(valid, wgt, 0.0)               # zeros padding
            ci = jnp.clip(coord, 0.0, lim - 1.0).astype(jnp.int32)
            return ci, wm

        x0i, wx0m = axis_weight(x0, wx0, fW)
        x1i, wx1m = axis_weight(x1, wx1, fW)
        y0i, wy0m = axis_weight(y0, wy0, fH)
        y1i, wy1m = axis_weight(y1, wy1, fH)

        # Separable bilinear sampling:
        #   sx[x, p]  = wx weights of output pixel p for source column x       (W, P)
        #   wy[r, p]  = wy weights for source row (r % H), replicated per chan (C*H, P)
        sx = (jnp.where(xs_v == x0i, wx0m, 0.0)
              + jnp.where(xs_v == x1i, wx1m, 0.0))
        wyf = (jnp.where(ys_v == y0i, wy0m, 0.0)
               + jnp.where(ys_v == y1i, wy1m, 0.0))

        g = jnp.dot(ximg_ref[b], sx, preferred_element_type=jnp.float32)  # (C*H, P)
        out_ref[b] = jnp.dot(rsum_v, wyf * g,
                             preferred_element_type=jnp.float32).astype(out_ref.dtype)


# ----------------------------------------------------------------------------
# Host-side (trace-time) constant / weight preparation
# ----------------------------------------------------------------------------
def _prep_conv(w_oihw, b, hin, win, pad):
    """Fold ReplicationPad2d(pad)+Conv2d into matmul operands:
      PH[dy][i, h]               = [h == clip(i+dy-pad, 0, hin-1)]
      A[dy][w*cin+ci, j*cout+co] = sum_dx [w == clip(j+dx-pad, 0, win-1)] * W[co,ci,dy,dx]
    Returns (PH (k,ho,hin), A (k,win*cin,wo*cout), bias_row (1,wo*cout), ho, wo)."""
    cout, cin, k, _ = w_oihw.shape
    ho = hin + 2 * pad - k + 1
    wo = win + 2 * pad - k + 1

    dy = np.arange(k)[:, None, None]
    ii = np.arange(ho)[None, :, None]
    hh = np.arange(hin)[None, None, :]
    ph = (hh == np.clip(ii + dy - pad, 0, hin - 1)).astype(np.float32)    # (k, ho, hin)

    dx = np.arange(k)[:, None, None]
    ws = np.arange(win)[None, :, None]
    jj = np.arange(wo)[None, None, :]
    m = (ws == np.clip(jj + dx - pad, 0, win - 1)).astype(np.float32)     # (k, win, wo)

    a = jnp.einsum("xwj,oiyx->ywijo", jnp.asarray(m), w_oihw)             # (k,win,cin,wo,cout)
    a = a.reshape(k, win * cin, wo * cout)
    brow = jnp.tile(b, (wo,))[None, :]                                    # (1, wo*cout)
    return jnp.asarray(ph), a, brow, ho, wo


def _pool_sel(hin, win, ch):
    """Selection matrices for a 2x2/stride-2 max pool on an (hin, win*ch) slab:
       rsel (2, hout, hin), csel (2, win*ch, wout*ch)."""
    hout, wout = hin // 2, win // 2
    par = np.arange(2)[:, None, None]
    r = np.arange(hout)[None, :, None]
    c = np.arange(hin)[None, None, :]
    rsel = (c == 2 * r + par).astype(np.float32)

    rr = np.arange(win * ch)[None, :, None]
    cc = np.arange(wout * ch)[None, None, :]
    csel = (((rr // ch) == (2 * (cc // ch) + par))
            & ((rr % ch) == (cc % ch))).astype(np.float32)
    return jnp.asarray(rsel), jnp.asarray(csel)


def _prep_fc(w_fc, s_h, s_w, ch):
    """Reorder the (C*H*W, out) linear weight (PyTorch NCHW flatten order) to the
    kernel's (H, W*C) activation layout: returns (s_h, s_w*ch, out)."""
    fc_out = w_fc.shape[1]
    wt = w_fc.reshape(ch, s_h, s_w, fc_out)      # rows were ordered (c, h, w)
    wt = jnp.transpose(wt, (1, 2, 0, 3))         # (h, w, c, o)
    return wt.reshape(s_h, s_w * ch, fc_out)


def _bcast_spec(arr):
    """Full-array block, same block for every grid step (constants / weights)."""
    zeros = (0,) * arr.ndim
    return pl.BlockSpec(arr.shape, lambda n: zeros)


# ----------------------------------------------------------------------------
# Parameters + forward
# ----------------------------------------------------------------------------
def loc_spatial_size(input_size):
    s = input_size // 2          # self.maxpool
    s = (s + 4 - 5 + 1) // 2     # pad2 + conv5 + pool
    s = (s + 4 - 5 + 1) // 2     # pad2 + conv5 + pool
    s = (s + 4 - 3 + 1) // 2     # pad2 + conv3 + pool
    return s


def init_stn_params(key, input_channels, input_size, params_cfg):
    p0, p1, p2, p3 = params_cfg

    def conv_init(k_, ksz, cin, cout):
        kw, kb = jax.random.split(k_)
        bound = 1.0 / math.sqrt(cin * ksz * ksz)
        w = jax.random.uniform(kw, (cout, cin, ksz, ksz), jnp.float32, -bound, bound)
        b = jax.random.uniform(kb, (cout,), jnp.float32, -bound, bound)
        return w, b

    def lin_init(k_, fin, fout):
        kw, kb = jax.random.split(k_)
        bound = 1.0 / math.sqrt(fin)
        w = jax.random.uniform(kw, (fin, fout), jnp.float32, -bound, bound)
        b = jax.random.uniform(kb, (fout,), jnp.float32, -bound, bound)
        return w, b

    k1, k2, k3, k4 = jax.random.split(key, 4)
    w1, b1 = conv_init(k1, 5, input_channels, p0)
    w2, b2 = conv_init(k2, 5, p0, p1)
    w3, b3 = conv_init(k3, 3, p1, p2)
    s = loc_spatial_size(input_size)
    w_fc, b_fc = lin_init(k4, p2 * s * s, p3)
    # classifier: weight.fill_(0), bias = [1, 0, 0, 0, 1, 0]  (identity affine)
    w_cls = jnp.zeros((p3, 6), jnp.float32)
    b_cls = jnp.array([1.0, 0.0, 0.0, 0.0, 1.0, 0.0], jnp.float32)
    return dict(w1=w1, b1=b1, w2=w2, b2=b2, w3=w3, b3=b3,
                w_fc=w_fc, b_fc=b_fc, w_cls=w_cls, b_cls=b_cls)


@jax.jit
def stn_forward(x_nchw, p):
    N, C, H, W = x_nchw.shape
    c1 = p["w1"].shape[0]
    c2 = p["w2"].shape[0]
    c3 = p["w3"].shape[0]
    P = H * W

    # ---- fold pad+conv / pool / flatten into matmul operands (trace-time, cached) ----
    sh, sw = H // 2, W // 2                                       # after leading maxpool
    rs0, cs0 = _pool_sel(H, W, C)
    ph1, a1, b1r, sh, sw = _prep_conv(p["w1"], p["b1"], sh, sw, pad=2)
    rs1, cs1 = _pool_sel(sh, sw, c1)
    sh, sw = sh // 2, sw // 2
    ph2, a2, b2r, sh, sw = _prep_conv(p["w2"], p["b2"], sh, sw, pad=2)
    rs2, cs2 = _pool_sel(sh, sw, c2)
    sh, sw = sh // 2, sw // 2
    ph3, a3, b3r, sh, sw = _prep_conv(p["w3"], p["b3"], sh, sw, pad=2)
    rs3, cs3 = _pool_sel(sh, sw, c3)
    sh, sw = sh // 2, sw // 2
    wfc = _prep_fc(p["w_fc"], sh, sw, c3)
    bfc = p["b_fc"][None, :]
    wcls = p["w_cls"]
    bcls = p["b_cls"][None, :]

    # ---- constant sampling-grid operands (hoisted out of the kernel) ----
    xo = np.arange(P, dtype=np.float32) % W
    yo = np.arange(P, dtype=np.float32) // W
    bgrid = np.stack([(2.0 * xo + 1.0) / W - 1.0,
                      (2.0 * yo + 1.0) / H - 1.0]).astype(np.float32)       # (2, P)
    xs = np.arange(W, dtype=np.int32)[:, None]                              # (W, 1)
    ys = (np.arange(C * H, dtype=np.int32) % H)[:, None]                    # (C*H, 1)
    rsum = (np.arange(C)[:, None]
            == (np.arange(C * H)[None, :] // H)).astype(np.float32)         # (C, C*H)

    # ---- batch blocking: B images per grid step, >=2 steps when N>=2 ----
    if N >= 2:
        bb = min(8, (N + 1) // 2)
    else:
        bb = 1
    npad = ((N + bb - 1) // bb) * bb
    if npad != N:
        x_nchw = jnp.concatenate(
            [x_nchw, jnp.zeros((npad - N, C, H, W), x_nchw.dtype)], axis=0)

    # Two lane-friendly views of the input (layout plumbing stays in XLA).
    x2 = jnp.transpose(x_nchw, (0, 2, 3, 1)).reshape(npad, H, W * C)   # loc-net view
    ximg = x_nchw.reshape(npad, C * H, W)                              # sampler view

    weights = (rs0, cs0, rs1, cs1, rs2, cs2, rs3, cs3,
               ph1, a1, b1r, ph2, a2, b2r, ph3, a3, b3r,
               wfc, bfc, wcls, bcls,
               jnp.asarray(bgrid), jnp.asarray(xs), jnp.asarray(ys), jnp.asarray(rsum))
    in_specs = [
        pl.BlockSpec((bb, H, W * C), lambda n: (n, 0, 0)),
        pl.BlockSpec((bb, C * H, W), lambda n: (n, 0, 0)),
    ] + [_bcast_spec(a) for a in weights]

    out = pl.pallas_call(
        functools.partial(_stn_kernel, B=bb, H=H, W=W, C=C),
        grid=(npad // bb,),
        in_specs=in_specs,
        out_specs=pl.BlockSpec((bb, C, P), lambda n: (n, 0, 0)),
        out_shape=jax.ShapeDtypeStruct((npad, C, P), jnp.float32),
        compiler_params=pltpu.CompilerParams(
            dimension_semantics=("parallel",),
            vmem_limit_bytes=32 * 1024 * 1024),
    )(x2, ximg, *weights)

    return out[:N].reshape(N, C, H, W)          # (N, C, H*W) is already NCHW order


if __name__ == "__main__":
    key = jax.random.PRNGKey(0)
    k_in, k_param = jax.random.split(key)

    N, Cin, S = 2, 4, 16
    params_cfg = (8, 8, 8, 32)

    x = jax.random.normal(k_in, (N, Cin, S, S), dtype=jnp.float32)
    params = init_stn_params(k_param, Cin, S, params_cfg)

    out = stn_forward(x, params)
    out = jax.block_until_ready(out)

    assert out.shape == (N, Cin, S, S), out.shape
    # With the module's init (classifier weight=0, bias=[1,0,0,0,1,0]) theta is the
    # identity affine transform, so grid_sample must reproduce the input exactly.
    assert bool(jnp.allclose(out, x, atol=1e-5)), "identity-theta grid_sample mismatch"

    print("KERNEL_OK")
</pallas_src>

<mosaic_0001>
module attributes {stable_mosaic.version = 11 : i64} {
  func.func @_stn_kernel(%arg0: i32, %arg1: memref<1x16x64xf32, #tpu.memory_space<vmem>>, %arg2: memref<1x64x16xf32, #tpu.memory_space<vmem>>, %arg3: memref<2x8x16xf32, #tpu.memory_space<vmem>>, %arg4: memref<2x64x32xf32, #tpu.memory_space<vmem>>, %arg5: memref<2x4x8xf32, #tpu.memory_space<vmem>>, %arg6: memref<2x64x32xf32, #tpu.memory_space<vmem>>, %arg7: memref<2x2x4xf32, #tpu.memory_space<vmem>>, %arg8: memref<2x32x16xf32, #tpu.memory_space<vmem>>, %arg9: memref<2x2x4xf32, #tpu.memory_space<vmem>>, %arg10: memref<2x32x16xf32, #tpu.memory_space<vmem>>, %arg11: memref<5x8x8xf32, #tpu.memory_space<vmem>>, %arg12: memref<5x32x64xf32, #tpu.memory_space<vmem>>, %arg13: memref<1x64xf32, #tpu.memory_space<vmem>>, %arg14: memref<5x4x4xf32, #tpu.memory_space<vmem>>, %arg15: memref<5x32x32xf32, #tpu.memory_space<vmem>>, %arg16: memref<1x32xf32, #tpu.memory_space<vmem>>, %arg17: memref<3x4x2xf32, #tpu.memory_space<vmem>>, %arg18: memref<3x16x32xf32, #tpu.memory_space<vmem>>, %arg19: memref<1x32xf32, #tpu.memory_space<vmem>>, %arg20: memref<2x16x32xf32, #tpu.memory_space<vmem>>, %arg21: memref<1x32xf32, #tpu.memory_space<vmem>>, %arg22: memref<32x6xf32, #tpu.memory_space<vmem>>, %arg23: memref<1x6xf32, #tpu.memory_space<vmem>>, %arg24: memref<2x256xf32, #tpu.memory_space<vmem>>, %arg25: memref<16x1xi32, #tpu.memory_space<vmem>>, %arg26: memref<64x1xi32, #tpu.memory_space<vmem>>, %arg27: memref<4x64xf32, #tpu.memory_space<vmem>>, %arg28: memref<1x4x256xf32, #tpu.memory_space<vmem>>) attributes {dimension_semantics = [#tpu.dimension_semantics<parallel>], iteration_bounds = array<i64: 2>, scalar_prefetch = 0 : i64, scratch_operands = 0 : i64, tpu.core_type = #tpu.core_type<tc>, window_params = [{transform_indices = @transform_0, window_bounds = array<i64: 1, 16, 64>}, {transform_indices = @transform_1, window_bounds = array<i64: 1, 64, 16>}, {pipeline_mode = #tpu.pipeline_mode<synchronous>, transform_indices = @transform_2, window_bounds = array<i64: 2, 8, 16>}, {pipeline_mode = #tpu.pipeline_mode<synchronous>, transform_indices = @transform_3, window_bounds = array<i64: 2, 64, 32>}, {pipeline_mode = #tpu.pipeline_mode<synchronous>, transform_indices = @transform_4, window_bounds = array<i64: 2, 4, 8>}, {pipeline_mode = #tpu.pipeline_mode<synchronous>, transform_indices = @transform_5, window_bounds = array<i64: 2, 64, 32>}, {pipeline_mode = #tpu.pipeline_mode<synchronous>, transform_indices = @transform_6, window_bounds = array<i64: 2, 2, 4>}, {pipeline_mode = #tpu.pipeline_mode<synchronous>, transform_indices = @transform_7, window_bounds = array<i64: 2, 32, 16>}, {pipeline_mode = #tpu.pipeline_mode<synchronous>, transform_indices = @transform_8, window_bounds = array<i64: 2, 2, 4>}, {pipeline_mode = #tpu.pipeline_mode<synchronous>, transform_indices = @transform_9, window_bounds = array<i64: 2, 32, 16>}, {pipeline_mode = #tpu.pipeline_mode<synchronous>, transform_indices = @transform_10, window_bounds = array<i64: 5, 8, 8>}, {pipeline_mode = #tpu.pipeline_mode<synchronous>, transform_indices = @transform_11, window_bounds = array<i64: 5, 32, 64>}, {pipeline_mode = #tpu.pipeline_mode<synchronous>, transform_indices = @transform_12, window_bounds = array<i64: 1, 64>}, {pipeline_mode = #tpu.pipeline_mode<synchronous>, transform_indices = @transform_13, window_bounds = array<i64: 5, 4, 4>}, {pipeline_mode = #tpu.pipeline_mode<synchronous>, transform_indices = @transform_14, window_bounds = array<i64: 5, 32, 32>}, {pipeline_mode = #tpu.pipeline_mode<synchronous>, transform_indices = @transform_15, window_bounds = array<i64: 1, 32>}, {pipeline_mode = #tpu.pipeline_mode<synchronous>, transform_indices = @transform_16, window_bounds = array<i64: 3, 4, 2>}, {pipeline_mode = #tpu.pipeline_mode<synchronous>, transform_indices = @transform_17, window_bounds = array<i64: 3, 16, 32>}, {pipeline_mode = #tpu.pipeline_mode<synchronous>, transform_indices = @transform_18, window_bounds = array<i64: 1, 32>}, {pipeline_mode = #tpu.pipeline_mode<synchronous>, transform_indices = @transform_19, window_bounds = array<i64: 2, 16, 32>}, {pipeline_mode = #tpu.pipeline_mode<synchronous>, transform_indices = @transform_20, window_bounds = array<i64: 1, 32>}, {pipeline_mode = #tpu.pipeline_mode<synchronous>, transform_indices = @transform_21, window_bounds = array<i64: 32, 6>}, {pipeline_mode = #tpu.pipeline_mode<synchronous>, transform_indices = @transform_22, window_bounds = array<i64: 1, 6>}, {pipeline_mode = #tpu.pipeline_mode<synchronous>, transform_indices = @transform_23, window_bounds = array<i64: 2, 256>}, {pipeline_mode = #tpu.pipeline_mode<synchronous>, transform_indices = @transform_24, window_bounds = array<i64: 16, 1>}, {pipeline_mode = #tpu.pipeline_mode<synchronous>, transform_indices = @transform_25, window_bounds = array<i64: 64, 1>}, {pipeline_mode = #tpu.pipeline_mode<synchronous>, transform_indices = @transform_26, window_bounds = array<i64: 4, 64>}, {transform_indices = @transform_27, window_bounds = array<i64: 1, 4, 256>}]} {
    %c0 = arith.constant 0 : index
    %c0_0 = arith.constant 0 : index
    %0 = vector.load %arg24[%c0, %c0_0] : memref<2x256xf32, #tpu.memory_space<vmem>>, vector<2x256xf32>
    %1 = vector.extract_strided_slice %0 {offsets = [0, 0], sizes = [1, 256], strides = [1, 1]} : vector<2x256xf32> to vector<1x256xf32>
    %2 = vector.extract_strided_slice %0 {offsets = [1, 0], sizes = [1, 256], strides = [1, 1]} : vector<2x256xf32> to vector<1x256xf32>
    %c0_1 = arith.constant 0 : index
    %c0_2 = arith.constant 0 : index
    %3 = vector.load %arg25[%c0_1, %c0_2] : memref<16x1xi32, #tpu.memory_space<vmem>>, vector<16x1xi32>
    %c0_3 = arith.constant 0 : index
    %c0_4 = arith.constant 0 : index
    %4 = vector.load %arg26[%c0_3, %c0_4] : memref<64x1xi32, #tpu.memory_space<vmem>>, vector<64x1xi32>
    %c0_5 = arith.constant 0 : index
    %c0_6 = arith.constant 0 : index
    %5 = vector.load %arg27[%c0_5, %c0_6] : memref<4x64xf32, #tpu.memory_space<vmem>>, vector<4x64xf32>
    %c0_7 = arith.constant 0 : index
    %c0_8 = arith.constant 0 : index
    %6 = vector.load %arg21[%c0_7, %c0_8] : memref<1x32xf32, #tpu.memory_space<vmem>>, vector<1x32xf32>
    %c0_9 = arith.constant 0 : index
    %c0_10 = arith.constant 0 : index
    %7 = vector.load %arg22[%c0_9, %c0_10] : memref<32x6xf32, #tpu.memory_space<vmem>>, vector<32x6xf32>
    %c0_11 = arith.constant 0 : index
    %c0_12 = arith.constant 0 : index
    %8 = vector.load %arg23[%c0_11, %c0_12] : memref<1x6xf32, #tpu.memory_space<vmem>>, vector<1x6xf32>
    %c0_13 = arith.constant 0 : index
    %c0_14 = arith.constant 0 : index
    %c0_15 = arith.constant 0 : index
    %9 = vector.load %arg1[%c0_13, %c0_14, %c0_15] : memref<1x16x64xf32, #tpu.memory_space<vmem>>, vector<1x16x64xf32>
    %10 = vector.shape_cast %9 : vector<1x16x64xf32> to vector<16x64xf32>
    %c0_16 = arith.constant 0 : index
    %c0_17 = arith.constant 0 : index
    %c0_18 = arith.constant 0 : index
    %11 = vector.load %arg3[%c0_16, %c0_17, %c0_18] : memref<2x8x16xf32, #tpu.memory_space<vmem>>, vector<1x8x16xf32>
    %12 = vector.shape_cast %11 : vector<1x8x16xf32> to vector<8x16xf32>
    %cst = arith.constant dense<0.000000e+00> : vector<8x64xf32>
    %13 = tpu.matmul %12, %10, %cst {dimension_numbers = #tpu.dot_dimension_numbers<[1], [0], [0], [1], [0, 0, 1, 1], [], []>} : vector<8x16xf32>, vector<16x64xf32>, vector<8x64xf32> -> vector<8x64xf32>
    %c1 = arith.constant 1 : index
    %c0_19 = arith.constant 0 : index
    %c0_20 = arith.constant 0 : index
    %14 = vector.load %arg3[%c1, %c0_19, %c0_20] : memref<2x8x16xf32, #tpu.memory_space<vmem>>, vector<1x8x16xf32>
    %15 = vector.shape_cast %14 : vector<1x8x16xf32> to vector<8x16xf32>
    %cst_21 = arith.constant dense<0.000000e+00> : vector<8x64xf32>
    %16 = tpu.matmul %15, %10, %cst_21 {dimension_numbers = #tpu.dot_dimension_numbers<[1], [0], [0], [1], [0, 0, 1, 1], [], []>} : vector<8x16xf32>, vector<16x64xf32>, vector<8x64xf32> -> vector<8x64xf32>
    %17 = arith.maximumf %13, %16 : vector<8x64xf32>
    %c0_22 = arith.constant 0 : index
    %c0_23 = arith.constant 0 : index
    %c0_24 = arith.constant 0 : index
    %18 = vector.load %arg4[%c0_22, %c0_23, %c0_24] : memref<2x64x32xf32, #tpu.memory_space<vmem>>, vector<1x64x32xf32>
    %19 = vector.shape_cast %18 : vector<1x64x32xf32> to vector<64x32xf32>
    %cst_25 = arith.constant dense<0.000000e+00> : vector<8x32xf32>
    %20 = tpu.matmul %17, %19, %cst_25 {dimension_numbers = #tpu.dot_dimension_numbers<[1], [0], [0], [1], [0, 0, 1, 1], [], []>} : vector<8x64xf32>, vector<64x32xf32>, vector<8x32xf32> -> vector<8x32xf32>
    %c1_26 = arith.constant 1 : index
    %c0_27 = arith.constant 0 : index
    %c0_28 = arith.constant 0 : index
    %21 = vector.load %arg4[%c1_26, %c0_27, %c0_28] : memref<2x64x32xf32, #tpu.memory_space<vmem>>, vector<1x64x32xf32>
    %22 = vector.shape_cast %21 : vector<1x64x32xf32> to vector<64x32xf32>
    %cst_29 = arith.constant dense<0.000000e+00> : vector<8x32xf32>
    %23 = tpu.matmul %17, %22, %cst_29 {dimension_numbers = #tpu.dot_dimension_numbers<[1], [0], [0], [1], [0, 0, 1, 1], [], []>} : vector<8x64xf32>, vector<64x32xf32>, vector<8x32xf32> -> vector<8x32xf32>
    %24 = arith.maximumf %20, %23 : vector<8x32xf32>
    %c0_30 = arith.constant 0 : index
    %c0_31 = arith.constant 0 : index
    %c0_32 = arith.constant 0 : index
    %25 = vector.load %arg11[%c0_30, %c0_31, %c0_32] : memref<5x8x8xf32, #tpu.memory_space<vmem>>, vector<1x8x8xf32>
    %26 = vector.shape_cast %25 : vector<1x8x8xf32> to vector<8x8xf32>
    %cst_33 = arith.constant dense<0.000000e+00> : vector<8x32xf32>
    %27 = tpu.matmul %26, %24, %cst_33 {dimension_numbers = #tpu.dot_dimension_numbers<[1], [0], [0], [1], [0, 0, 1, 1], [], []>} : vector<8x8xf32>, vector<8x32xf32>, vector<8x32xf32> -> vector<8x32xf32>
    %c0_34 = arith.constant 0 : index
    %c0_35 = arith.constant 0 : index
    %c0_36 = arith.constant 0 : index
    %28 = vector.load %arg12[%c0_34, %c0_35, %c0_36] : memref<5x32x64xf32, #tpu.memory_space<vmem>>, vector<1x32x64xf32>
    %29 = vector.shape_cast %28 : vector<1x32x64xf32> to vector<32x64xf32>
    %cst_37 = arith.constant dense<0.000000e+00> : vector<8x64xf32>
    %30 = tpu.matmul %27, %29, %cst_37 {dimension_numbers = #tpu.dot_dimension_numbers<[1], [0], [0], [1], [0, 0, 1, 1], [], []>} : vector<8x32xf32>, vector<32x64xf32>, vector<8x64xf32> -> vector<8x64xf32>
    %c1_38 = arith.constant 1 : index
    %c0_39 = arith.constant 0 : index
    %c0_40 = arith.constant 0 : index
    %31 = vector.load %arg11[%c1_38, %c0_39, %c0_40] : memref<5x8x8xf32, #tpu.memory_space<vmem>>, vector<1x8x8xf32>
    %32 = vector.shape_cast %31 : vector<1x8x8xf32> to vector<8x8xf32>
    %cst_41 = arith.constant dense<0.000000e+00> : vector<8x32xf32>
    %33 = tpu.matmul %32, %24, %cst_41 {dimension_numbers = #tpu.dot_dimension_numbers<[1], [0], [0], [1], [0, 0, 1, 1], [], []>} : vector<8x8xf32>, vector<8x32xf32>, vector<8x32xf32> -> vector<8x32xf32>
    %c1_42 = arith.constant 1 : index
    %c0_43 = arith.constant 0 : index
    %c0_44 = arith.constant 0 : index
    %34 = vector.load %arg12[%c1_42, %c0_43, %c0_44] : memref<5x32x64xf32, #tpu.memory_space<vmem>>, vector<1x32x64xf32>
    %35 = vector.shape_cast %34 : vector<1x32x64xf32> to vector<32x64xf32>
    %cst_45 = arith.constant dense<0.000000e+00> : vector<8x64xf32>
    %36 = tpu.matmul %33, %35, %cst_45 {dimension_numbers = #tpu.dot_dimension_numbers<[1], [0], [0], [1], [0, 0, 1, 1], [], []>} : vector<8x32xf32>, vector<32x64xf32>, vector<8x64xf32> -> vector<8x64xf32>
    %37 = arith.addf %30, %36 : vector<8x64xf32>
    %c2 = arith.constant 2 : index
    %c0_46 = arith.constant 0 : index
    %c0_47 = arith.constant 0 : index
    %38 = vector.load %arg11[%c2, %c0_46, %c0_47] : memref<5x8x8xf32, #tpu.memory_space<vmem>>, vector<1x8x8xf32>
    %39 = vector.shape_cast %38 : vector<1x8x8xf32> to vector<8x8xf32>
    %cst_48 = arith.constant dense<0.000000e+00> : vector<8x32xf32>
    %40 = tpu.matmul %39, %24, %cst_48 {dimension_numbers = #tpu.dot_dimension_numbers<[1], [0], [0], [1], [0, 0, 1, 1], [], []>} : vector<8x8xf32>, vector<8x32xf32>, vector<8x32xf32> -> vector<8x32xf32>
    %c2_49 = arith.constant 2 : index
    %c0_50 = arith.constant 0 : index
    %c0_51 = arith.constant 0 : index
    %41 = vector.load %arg12[%c2_49, %c0_50, %c0_51] : memref<5x32x64xf32, #tpu.memory_space<vmem>>, vector<1x32x64xf32>
    %42 = vector.shape_cast %41 : vector<1x32x64xf32> to vector<32x64xf32>
    %cst_52 = arith.constant dense<0.000000e+00> : vector<8x64xf32>
    %43 = tpu.matmul %40, %42, %cst_52 {dimension_numbers = #tpu.dot_dimension_numbers<[1], [0], [0], [1], [0, 0, 1, 1], [], []>} : vector<8x32xf32>, vector<32x64xf32>, vector<8x64xf32> -> vector<8x64xf32>
    %44 = arith.addf %37, %43 : vector<8x64xf32>
    %c3 = arith.constant 3 : index
    %c0_53 = arith.constant 0 : index
    %c0_54 = arith.constant 0 : index
    %45 = vector.load %arg11[%c3, %c0_53, %c0_54] : memref<5x8x8xf32, #tpu.memory_space<vmem>>, vector<1x8x8xf32>
    %46 = vector.shape_cast %45 : vector<1x8x8xf32> to vector<8x8xf32>
    %cst_55 = arith.constant dense<0.000000e+00> : vector<8x32xf32>
    %47 = tpu.matmul %46, %24, %cst_55 {dimension_numbers = #tpu.dot_dimension_numbers<[1], [0], [0], [1], [0, 0, 1, 1], [], []>} : vector<8x8xf32>, vector<8x32xf32>, vector<8x32xf32> -> vector<8x32xf32>
    %c3_56 = arith.constant 3 : index
    %c0_57 = arith.constant 0 : index
    %c0_58 = arith.constant 0 : index
    %48 = vector.load %arg12[%c3_56, %c0_57, %c0_58] : memref<5x32x64xf32, #tpu.memory_space<vmem>>, vector<1x32x64xf32>
    %49 = vector.shape_cast %48 : vector<1x32x64xf32> to vector<32x64xf32>
    %cst_59 = arith.constant dense<0.000000e+00> : vector<8x64xf32>
    %50 = tpu.matmul %47, %49, %cst_59 {dimension_numbers = #tpu.dot_dimension_numbers<[1], [0], [0], [1], [0, 0, 1, 1], [], []>} : vector<8x32xf32>, vector<32x64xf32>, vector<8x64xf32> -> vector<8x64xf32>
    %51 = arith.addf %44, %50 : vector<8x64xf32>
    %c4 = arith.constant 4 : index
    %c0_60 = arith.constant 0 : index
    %c0_61 = arith.constant 0 : index
    %52 = vector.load %arg11[%c4, %c0_60, %c0_61] : memref<5x8x8xf32, #tpu.memory_space<vmem>>, vector<1x8x8xf32>
    %53 = vector.shape_cast %52 : vector<1x8x8xf32> to vector<8x8xf32>
    %cst_62 = arith.constant dense<0.000000e+00> : vector<8x32xf32>
    %54 = tpu.matmul %53, %24, %cst_62 {dimension_numbers = #tpu.dot_dimension_numbers<[1], [0], [0], [1], [0, 0, 1, 1], [], []>} : vector<8x8xf32>, vector<8x32xf32>, vector<8x32xf32> -> vector<8x32xf32>
    %c4_63 = arith.constant 4 : index
    %c0_64 = arith.constant 0 : index
    %c0_65 = arith.constant 0 : index
    %55 = vector.load %arg12[%c4_63, %c0_64, %c0_65] : memref<5x32x64xf32, #tpu.memory_space<vmem>>, vector<1x32x64xf32>
    %56 = vector.shape_cast %55 : vector<1x32x64xf32> to vector<32x64xf32>
    %cst_66 = arith.constant dense<0.000000e+00> : vector<8x64xf32>
    %57 = tpu.matmul %54, %56, %cst_66 {dimension_numbers = #tpu.dot_dimension_numbers<[1], [0], [0], [1], [0, 0, 1, 1], [], []>} : vector<8x32xf32>, vector<32x64xf32>, vector<8x64xf32> -> vector<8x64xf32>
    %58 = arith.addf %51, %57 : vector<8x64xf32>
    %c0_67 = arith.constant 0 : index
    %c0_68 = arith.constant 0 : index
    %59 = vector.load %arg13[%c0_67, %c0_68] : memref<1x64xf32, #tpu.memory_space<vmem>>, vector<1x64xf32>
    %60 = vector.broadcast %59 : vector<1x64xf32> to vector<8x64xf32>
    %61 = arith.addf %58, %60 : vector<8x64xf32>
    %cst_69 = arith.constant 0.000000e+00 : f32
    %62 = vector.broadcast %cst_69 : f32 to vector<8x64xf32>
    %63 = arith.maximumf %61, %62 : vector<8x64xf32>
    %c0_70 = arith.constant 0 : index
    %c0_71 = arith.constant 0 : index
    %c0_72 = arith.constant 0 : index
    %64 = vector.load %arg5[%c0_70, %c0_71, %c0_72] : memref<2x4x8xf32, #tpu.memory_space<vmem>>, vector<1x4x8xf32>
    %65 = vector.shape_cast %64 : vector<1x4x8xf32> to vector<4x8xf32>
    %cst_73 = arith.constant dense<0.000000e+00> : vector<4x64xf32>
    %66 = tpu.matmul %65, %63, %cst_73 {dimension_numbers = #tpu.dot_dimension_numbers<[1], [0], [0], [1], [0, 0, 1, 1], [], []>} : vector<4x8xf32>, vector<8x64xf32>, vector<4x64xf32> -> vector<4x64xf32>
    %c1_74 = arith.constant 1 : index
    %c0_75 = arith.constant 0 : index
    %c0_76 = arith.constant 0 : index
    %67 = vector.load %arg5[%c1_74, %c0_75, %c0_76] : memref<2x4x8xf32, #tpu.memory_space<vmem>>, vector<1x4x8xf32>
    %68 = vector.shape_cast %67 : vector<1x4x8xf32> to vector<4x8xf32>
    %cst_77 = arith.constant dense<0.000000e+00> : vector<4x64xf32>
    %69 = tpu.matmul %68, %63, %cst_77 {dimension_numbers = #tpu.dot_dimension_numbers<[1], [0], [0], [1], [0, 0, 1, 1], [], []>} : vector<4x8xf32>, vector<8x64xf32>, vector<4x64xf32> -> vector<4x64xf32>
    %70 = arith.maximumf %66, %69 : vector<4x64xf32>
    %c0_78 = arith.constant 0 : index
    %c0_79 = arith.constant 0 : index
    %c0_80 = arith.constant 0 : index
    %71 = vector.load %arg6[%c0_78, %c0_79, %c0_80] : memref<2x64x32xf32, #tpu.memory_space<vmem>>, vector<1x64x32xf32>
    %72 = vector.shape_cast %71 : vector<1x64x32xf32> to vector<64x32xf32>
    %cst_81 = arith.constant dense<0.000000e+00> : vector<4x32xf32>
    %73 = tpu.matmul %70, %72, %cst_81 {dimension_numbers = #tpu.dot_dimension_numbers<[1], [0], [0], [1], [0, 0, 1, 1], [], []>} : vector<4x64xf32>, vector<64x32xf32>, vector<4x32xf32> -> vector<4x32xf32>
    %c1_82 = arith.constant 1 : index
    %c0_83 = arith.constant 0 : index
    %c0_84 = arith.constant 0 : index
    %74 = vector.load %arg6[%c1_82, %c0_83, %c0_84] : memref<2x64x32xf32, #tpu.memory_space<vmem>>, vector<1x64x32xf32>
    %75 = vector.shape_cast %74 : vector<1x64x32xf32> to vector<64x32xf32>
    %cst_85 = arith.constant dense<0.000000e+00> : vector<4x32xf32>
    %76 = tpu.matmul %70, %75, %cst_85 {dimension_numbers = #tpu.dot_dimension_numbers<[1], [0], [0], [1], [0, 0, 1, 1], [], []>} : vector<4x64xf32>, vector<64x32xf32>, vector<4x32xf32> -> vector<4x32xf32>
    %77 = arith.maximumf %73, %76 : vector<4x32xf32>
    %c0_86 = arith.constant 0 : index
    %c0_87 = arith.constant 0 : index
    %c0_88 = arith.constant 0 : index
    %78 = vector.load %arg14[%c0_86, %c0_87, %c0_88] : memref<5x4x4xf32, #tpu.memory_space<vmem>>, vector<1x4x4xf32>
    %79 = vector.shape_cast %78 : vector<1x4x4xf32> to vector<4x4xf32>
    %cst_89 = arith.constant dense<0.000000e+00> : vector<4x32xf32>
    %80 = tpu.matmul %79, %77, %cst_89 {dimension_numbers = #tpu.dot_dimension_numbers<[1], [0], [0], [1], [0, 0, 1, 1], [], []>} : vector<4x4xf32>, vector<4x32xf32>, vector<4x32xf32> -> vector<4x32xf32>
    %c0_90 = arith.constant 0 : index
    %c0_91 = arith.constant 0 : index
    %c0_92 = arith.constant 0 : index
    %81 = vector.load %arg15[%c0_90, %c0_91, %c0_92] : memref<5x32x32xf32, #tpu.memory_space<vmem>>, vector<1x32x32xf32>
    %82 = vector.shape_cast %81 : vector<1x32x32xf32> to vector<32x32xf32>
    %cst_93 = arith.constant dense<0.000000e+00> : vector<4x32xf32>
    %83 = tpu.matmul %80, %82, %cst_93 {dimension_numbers = #tpu.dot_dimension_numbers<[1], [0], [0], [1], [0, 0, 1, 1], [], []>} : vector<4x32xf32>, vector<32x32xf32>, vector<4x32xf32> -> vector<4x32xf32>
    %c1_94 = arith.constant 1 : index
    %c0_95 = arith.constant 0 : index
    %c0_96 = arith.constant 0 : index
    %84 = vector.load %arg14[%c1_94, %c0_95, %c0_96] : memref<5x4x4xf32, #tpu.memory_space<vmem>>, vector<1x4x4xf32>
    %85 = vector.shape_cast %84 : vector<1x4x4xf32> to vector<4x4xf32>
    %cst_97 = arith.constant dense<0.000000e+00> : vector<4x32xf32>
    %86 = tpu.matmul %85, %77, %cst_97 {dimension_numbers = #tpu.dot_dimension_numbers<[1], [0], [0], [1], [0, 0, 1, 1], [], []>} : vector<4x4xf32>, vector<4x32xf32>, vector<4x32xf32> -> vector<4x32xf32>
    %c1_98 = arith.constant 1 : index
    %c0_99 = arith.constant 0 : index
    %c0_100 = arith.constant 0 : index
    %87 = vector.load %arg15[%c1_98, %c0_99, %c0_100] : memref<5x32x32xf32, #tpu.memory_space<vmem>>, vector<1x32x32xf32>
    %88 = vector.shape_cast %87 : vector<1x32x32xf32> to vector<32x32xf32>
    %cst_101 = arith.constant dense<0.000000e+00> : vector<4x32xf32>
    %89 = tpu.matmul %86, %88, %cst_101 {dimension_numbers = #tpu.dot_dimension_numbers<[1], [0], [0], [1], [0, 0, 1, 1], [], []>} : vector<4x32xf32>, vector<32x32xf32>, vector<4x32xf32> -> vector<4x32xf32>
    %90 = arith.addf %83, %89 : vector<4x32xf32>
    %c2_102 = arith.constant 2 : index
    %c0_103 = arith.constant 0 : index
    %c0_104 = arith.constant 0 : index
    %91 = vector.load %arg14[%c2_102, %c0_103, %c0_104] : memref<5x4x4xf32, #tpu.memory_space<vmem>>, vector<1x4x4xf32>
    %92 = vector.shape_cast %91 : vector<1x4x4xf32> to vector<4x4xf32>
    %cst_105 = arith.constant dense<0.000000e+00> : vector<4x32xf32>
    %93 = tpu.matmul %92, %77, %cst_105 {dimension_numbers = #tpu.dot_dimension_numbers<[1], [0], [0], [1], [0, 0, 1, 1], [], []>} : vector<4x4xf32>, vector<4x32xf32>, vector<4x32xf32> -> vector<4x32xf32>
    %c2_106 = arith.constant 2 : index
    %c0_107 = arith.constant 0 : index
    %c0_108 = arith.constant 0 : index
    %94 = vector.load %arg15[%c2_106, %c0_107, %c0_108] : memref<5x32x32xf32, #tpu.memory_space<vmem>>, vector<1x32x32xf32>
    %95 = vector.shape_cast %94 : vector<1x32x32xf32> to vector<32x32xf32>
    %cst_109 = arith.constant dense<0.000000e+00> : vector<4x32xf32>
    %96 = tpu.matmul %93, %95, %cst_109 {dimension_numbers = #tpu.dot_dimension_numbers<[1], [0], [0], [1], [0, 0, 1, 1], [], []>} : vector<4x32xf32>, vector<32x32xf32>, vector<4x32xf32> -> vector<4x32xf32>
    %97 = arith.addf %90, %96 : vector<4x32xf32>
    %c3_110 = arith.constant 3 : index
    %c0_111 = arith.constant 0 : index
    %c0_112 = arith.constant 0 : index
    %98 = vector.load %arg14[%c3_110, %c0_111, %c0_112] : memref<5x4x4xf32, #tpu.memory_space<vmem>>, vector<1x4x4xf32>
    %99 = vector.shape_cast %98 : vector<1x4x4xf32> to vector<4x4xf32>
    %cst_113 = arith.constant dense<0.000000e+00> : vector<4x32xf32>
    %100 = tpu.matmul %99, %77, %cst_113 {dimension_numbers = #tpu.dot_dimension_numbers<[1], [0], [0], [1], [0, 0, 1, 1], [], []>} : vector<4x4xf32>, vector<4x32xf32>, vector<4x32xf32> -> vector<4x32xf32>
    %c3_114 = arith.constant 3 : index
    %c0_115 = arith.constant 0 : index
    %c0_116 = arith.constant 0 : index
    %101 = vector.load %arg15[%c3_114, %c0_115, %c0_116] : memref<5x32x32xf32, #tpu.memory_space<vmem>>, vector<1x32x32xf32>
    %102 = vector.shape_cast %101 : vector<1x32x32xf32> to vector<32x32xf32>
    %cst_117 = arith.constant dense<0.000000e+00> : vector<4x32xf32>
    %103 = tpu.matmul %100, %102, %cst_117 {dimension_numbers = #tpu.dot_dimension_numbers<[1], [0], [0], [1], [0, 0, 1, 1], [], []>} : vector<4x32xf32>, vector<32x32xf32>, vector<4x32xf32> -> vector<4x32xf32>
    %104 = arith.addf %97, %103 : vector<4x32xf32>
    %c4_118 = arith.constant 4 : index
    %c0_119 = arith.constant 0 : index
    %c0_120 = arith.constant 0 : index
    %105 = vector.load %arg14[%c4_118, %c0_119, %c0_120] : memref<5x4x4xf32, #tpu.memory_space<vmem>>, vector<1x4x4xf32>
    %106 = vector.shape_cast %105 : vector<1x4x4xf32> to vector<4x4xf32>
    %cst_121 = arith.constant dense<0.000000e+00> : vector<4x32xf32>
    %107 = tpu.matmul %106, %77, %cst_121 {dimension_numbers = #tpu.dot_dimension_numbers<[1], [0], [0], [1], [0, 0, 1, 1], [], []>} : vector<4x4xf32>, vector<4x32xf32>, vector<4x32xf32> -> vector<4x32xf32>
    %c4_122 = arith.constant 4 : index
    %c0_123 = arith.constant 0 : index
    %c0_124 = arith.constant 0 : index
    %108 = vector.load %arg15[%c4_122, %c0_123, %c0_124] : memref<5x32x32xf32, #tpu.memory_space<vmem>>, vector<1x32x32xf32>
    %109 = vector.shape_cast %108 : vector<1x32x32xf32> to vector<32x32xf32>
    %cst_125 = arith.constant dense<0.000000e+00> : vector<4x32xf32>
    %110 = tpu.matmul %107, %109, %cst_125 {dimension_numbers = #tpu.dot_dimension_numbers<[1], [0], [0], [1], [0, 0, 1, 1], [], []>} : vector<4x32xf32>, vector<32x32xf32>, vector<4x32xf32> -> vector<4x32xf32>
    %111 = arith.addf %104, %110 : vector<4x32xf32>
    %c0_126 = arith.constant 0 : index
    %c0_127 = arith.constant 0 : index
    %112 = vector.load %arg16[%c0_126, %c0_127] : memref<1x32xf32, #tpu.memory_space<vmem>>, vector<1x32xf32>
    %113 = vector.broadcast %112 : vector<1x32xf32> to vector<4x32xf32>
    %114 = arith.addf %111, %113 : vector<4x32xf32>
    %cst_128 = arith.constant 0.000000e+00 : f32
    %115 = vector.broadcast %cst_128 : f32 to vector<4x32xf32>
    %116 = arith.maximumf %114, %115 : vector<4x32xf32>
    %c0_129 = arith.constant 0 : index
    %c0_130 = arith.constant 0 : index
    %c0_131 = arith.constant 0 : index
    %117 = vector.load %arg7[%c0_129, %c0_130, %c0_131] : memref<2x2x4xf32, #tpu.memory_space<vmem>>, vector<1x2x4xf32>
    %118 = vector.shape_cast %117 : vector<1x2x4xf32> to vector<2x4xf32>
    %cst_132 = arith.constant dense<0.000000e+00> : vector<2x32xf32>
    %119 = tpu.matmul %118, %116, %cst_132 {dimension_numbers = #tpu.dot_dimension_numbers<[1], [0], [0], [1], [0, 0, 1, 1], [], []>} : vector<2x4xf32>, vector<4x32xf32>, vector<2x32xf32> -> vector<2x32xf32>
    %c1_133 = arith.constant 1 : index
    %c0_134 = arith.constant 0 : index
    %c0_135 = arith.constant 0 : index
    %120 = vector.load %arg7[%c1_133, %c0_134, %c0_135] : memref<2x2x4xf32, #tpu.memory_space<vmem>>, vector<1x2x4xf32>
    %121 = vector.shape_cast %120 : vector<1x2x4xf32> to vector<2x4xf32>
    %cst_136 = arith.constant dense<0.000000e+00> : vector<2x32xf32>
    %122 = tpu.matmul %121, %116, %cst_136 {dimension_numbers = #tpu.dot_dimension_numbers<[1], [0], [0], [1], [0, 0, 1, 1], [], []>} : vector<2x4xf32>, vector<4x32xf32>, vector<2x32xf32> -> vector<2x32xf32>
    %123 = arith.maximumf %119, %122 : vector<2x32xf32>
    %c0_137 = arith.constant 0 : index
    %c0_138 = arith.constant 0 : index
    %c0_139 = arith.constant 0 : index
    %124 = vector.load %arg8[%c0_137, %c0_138, %c0_139] : memref<2x32x16xf32, #tpu.memory_space<vmem>>, vector<1x32x16xf32>
    %125 = vector.shape_cast %124 : vector<1x32x16xf32> to vector<32x16xf32>
    %cst_140 = arith.constant dense<0.000000e+00> : vector<2x16xf32>
    %126 = tpu.matmul %123, %125, %cst_140 {dimension_numbers = #tpu.dot_dimension_numbers<[1], [0], [0], [1], [0, 0, 1, 1], [], []>} : vector<2x32xf32>, vector<32x16xf32>, vector<2x16xf32> -> vector<2x16xf32>
    %c1_141 = arith.constant 1 : index
    %c0_142 = arith.constant 0 : index
    %c0_143 = arith.constant 0 : index
    %127 = vector.load %arg8[%c1_141, %c0_142, %c0_143] : memref<2x32x16xf32, #tpu.memory_space<vmem>>, vector<1x32x16xf32>
    %128 = vector.shape_cast %127 : vector<1x32x16xf32> to vector<32x16xf32>
    %cst_144 = arith.constant dense<0.000000e+00> : vector<2x16xf32>
    %129 = tpu.matmul %123, %128, %cst_144 {dimension_numbers = #tpu.dot_dimension_numbers<[1], [0], [0], [1], [0, 0, 1, 1], [], []>} : vector<2x32xf32>, vector<32x16xf32>, vector<2x16xf32> -> vector<2x16xf32>
    %130 = arith.maximumf %126, %129 : vector<2x16xf32>
    %c0_145 = arith.constant 0 : index
    %c0_146 = arith.constant 0 : index
    %c0_147 = arith.constant 0 : index
    %131 = vector.load %arg17[%c0_145, %c0_146, %c0_147] : memref<3x4x2xf32, #tpu.memory_space<vmem>>, vector<1x4x2xf32>
    %132 = vector.shape_cast %131 : vector<1x4x2xf32> to vector<4x2xf32>
    %cst_148 = arith.constant dense<0.000000e+00> : vector<4x16xf32>
    %133 = tpu.matmul %132, %130, %cst_148 {dimension_numbers = #tpu.dot_dimension_numbers<[1], [0], [0], [1], [0, 0, 1, 1], [], []>} : vector<4x2xf32>, vector<2x16xf32>, vector<4x16xf32> -> vector<4x16xf32>
    %c0_149 = arith.constant 0 : index
    %c0_150 = arith.constant 0 : index
    %c0_151 = arith.constant 0 : index
    %134 = vector.load %arg18[%c0_149, %c0_150, %c0_151] : memref<3x16x32xf32, #tpu.memory_space<vmem>>, vector<1x16x32xf32>
    %135 = vector.shape_cast %134 : vector<1x16x32xf32> to vector<16x32xf32>
    %cst_152 = arith.constant dense<0.000000e+00> : vector<4x32xf32>
    %136 = tpu.matmul %133, %135, %cst_152 {dimension_numbers = #tpu.dot_dimension_numbers<[1], [0], [0], [1], [0, 0, 1, 1], [], []>} : vector<4x16xf32>, vector<16x32xf32>, vector<4x32xf32> -> vector<4x32xf32>
    %c1_153 = arith.constant 1 : index
    %c0_154 = arith.constant 0 : index
    %c0_155 = arith.constant 0 : index
    %137 = vector.load %arg17[%c1_153, %c0_154, %c0_155] : memref<3x4x2xf32, #tpu.memory_space<vmem>>, vector<1x4x2xf32>
    %138 = vector.shape_cast %137 : vector<1x4x2xf32> to vector<4x2xf32>
    %cst_156 = arith.constant dense<0.000000e+00> : vector<4x16xf32>
    %139 = tpu.matmul %138, %130, %cst_156 {dimension_numbers = #tpu.dot_dimension_numbers<[1], [0], [0], [1], [0, 0, 1, 1], [], []>} : vector<4x2xf32>, vector<2x16xf32>, vector<4x16xf32> -> vector<4x16xf32>
    %c1_157 = arith.constant 1 : index
    %c0_158 = arith.constant 0 : index
    %c0_159 = arith.constant 0 : index
    %140 = vector.load %arg18[%c1_157, %c0_158, %c0_159] : memref<3x16x32xf32, #tpu.memory_space<vmem>>, vector<1x16x32xf32>
    %141 = vector.shape_cast %140 : vector<1x16x32xf32> to vector<16x32xf32>
    %cst_160 = arith.constant dense<0.000000e+00> : vector<4x32xf32>
    %142 = tpu.matmul %139, %141, %cst_160 {dimension_numbers = #tpu.dot_dimension_numbers<[1], [0], [0], [1], [0, 0, 1, 1], [], []>} : vector<4x16xf32>, vector<16x32xf32>, vector<4x32xf32> -> vector<4x32xf32>
    %143 = arith.addf %136, %142 : vector<4x32xf32>
    %c2_161 = arith.constant 2 : index
    %c0_162 = arith.constant 0 : index
    %c0_163 = arith.constant 0 : index
    %144 = vector.load %arg17[%c2_161, %c0_162, %c0_163] : memref<3x4x2xf32, #tpu.memory_space<vmem>>, vector<1x4x2xf32>
    %145 = vector.shape_cast %144 : vector<1x4x2xf32> to vector<4x2xf32>
    %cst_164 = arith.constant dense<0.000000e+00> : vector<4x16xf32>
    %146 = tpu.matmul %145, %130, %cst_164 {dimension_numbers = #tpu.dot_dimension_numbers<[1], [0], [0], [1], [0, 0, 1, 1], [], []>} : vector<4x2xf32>, vector<2x16xf32>, vector<4x16xf32> -> vector<4x16xf32>
    %c2_165 = arith.constant 2 : index
    %c0_166 = arith.constant 0 : index
    %c0_167 = arith.constant 0 : index
    %147 = vector.load %arg18[%c2_165, %c0_166, %c0_167] : memref<3x16x32xf32, #tpu.memory_space<vmem>>, vector<1x16x32xf32>
    %148 = vector.shape_cast %147 : vector<1x16x32xf32> to vector<16x32xf32>
    %cst_168 = arith.constant dense<0.000000e+00> : vector<4x32xf32>
    %149 = tpu.matmul %146, %148, %cst_168 {dimension_numbers = #tpu.dot_dimension_numbers<[1], [0], [0], [1], [0, 0, 1, 1], [], []>} : vector<4x16xf32>, vector<16x32xf32>, vector<4x32xf32> -> vector<4x32xf32>
    %150 = arith.addf %143, %149 : vector<4x32xf32>
    %c0_169 = arith.constant 0 : index
    %c0_170 = arith.constant 0 : index
    %151 = vector.load %arg19[%c0_169, %c0_170] : memref<1x32xf32, #tpu.memory_space<vmem>>, vector<1x32xf32>
    %152 = vector.broadcast %151 : vector<1x32xf32> to vector<4x32xf32>
    %153 = arith.addf %150, %152 : vector<4x32xf32>
    %cst_171 = arith.constant 0.000000e+00 : f32
    %154 = vector.broadcast %cst_171 : f32 to vector<4x32xf32>
    %155 = arith.maximumf %153, %154 : vector<4x32xf32>
    %c0_172 = arith.constant 0 : index
    %c0_173 = arith.constant 0 : index
    %c0_174 = arith.constant 0 : index
    %156 = vector.load %arg9[%c0_172, %c0_173, %c0_174] : memref<2x2x4xf32, #tpu.memory_space<vmem>>, vector<1x2x4xf32>
    %157 = vector.shape_cast %156 : vector<1x2x4xf32> to vector<2x4xf32>
    %cst_175 = arith.constant dense<0.000000e+00> : vector<2x32xf32>
    %158 = tpu.matmul %157, %155, %cst_175 {dimension_numbers = #tpu.dot_dimension_numbers<[1], [0], [0], [1], [0, 0, 1, 1], [], []>} : vector<2x4xf32>, vector<4x32xf32>, vector<2x32xf32> -> vector<2x32xf32>
    %c1_176 = arith.constant 1 : index
    %c0_177 = arith.constant 0 : index
    %c0_178 = arith.constant 0 : index
    %159 = vector.load %arg9[%c1_176, %c0_177, %c0_178] : memref<2x2x4xf32, #tpu.memory_space<vmem>>, vector<1x2x4xf32>
    %160 = vector.shape_cast %159 : vector<1x2x4xf32> to vector<2x4xf32>
    %cst_179 = arith.constant dense<0.000000e+00> : vector<2x32xf32>
    %161 = tpu.matmul %160, %155, %cst_179 {dimension_numbers = #tpu.dot_dimension_numbers<[1], [0], [0], [1], [0, 0, 1, 1], [], []>} : vector<2x4xf32>, vector<4x32xf32>, vector<2x32xf32> -> vector<2x32xf32>
    %162 = arith.maximumf %158, %161 : vector<2x32xf32>
    %c0_180 = arith.constant 0 : index
    %c0_181 = arith.constant 0 : index
    %c0_182 = arith.constant 0 : index
    %163 = vector.load %arg10[%c0_180, %c0_181, %c0_182] : memref<2x32x16xf32, #tpu.memory_space<vmem>>, vector<1x32x16xf32>
    %164 = vector.shape_cast %163 : vector<1x32x16xf32> to vector<32x16xf32>
    %cst_183 = arith.constant dense<0.000000e+00> : vector<2x16xf32>
    %165 = tpu.matmul %162, %164, %cst_183 {dimension_numbers = #tpu.dot_dimension_numbers<[1], [0], [0], [1], [0, 0, 1, 1], [], []>} : vector<2x32xf32>, vector<32x16xf32>, vector<2x16xf32> -> vector<2x16xf32>
    %c1_184 = arith.constant 1 : index
    %c0_185 = arith.constant 0 : index
    %c0_186 = arith.constant 0 : index
    %166 = vector.load %arg10[%c1_184, %c0_185, %c0_186] : memref<2x32x16xf32, #tpu.memory_space<vmem>>, vector<1x32x16xf32>
    %167 = vector.shape_cast %166 : vector<1x32x16xf32> to vector<32x16xf32>
    %cst_187 = arith.constant dense<0.000000e+00> : vector<2x16xf32>
    %168 = tpu.matmul %162, %167, %cst_187 {dimension_numbers = #tpu.dot_dimension_numbers<[1], [0], [0], [1], [0, 0, 1, 1], [], []>} : vector<2x32xf32>, vector<32x16xf32>, vector<2x16xf32> -> vector<2x16xf32>
    %169 = arith.maximumf %165, %168 : vector<2x16xf32>
    %170 = vector.extract_strided_slice %169 {offsets = [0, 0], sizes = [1, 16], strides = [1, 1]} : vector<2x16xf32> to vector<1x16xf32>
    %c0_188 = arith.constant 0 : index
    %c0_189 = arith.constant 0 : index
    %c0_190 = arith.constant 0 : index
    %171 = vector.load %arg20[%c0_188, %c0_189, %c0_190] : memref<2x16x32xf32, #tpu.memory_space<vmem>>, vector<1x16x32xf32>
    %172 = vector.shape_cast %171 : vector<1x16x32xf32> to vector<16x32xf32>
    %cst_191 = arith.constant dense<0.000000e+00> : vector<1x32xf32>
    %173 = tpu.matmul %170, %172, %cst_191 {dimension_numbers = #tpu.dot_dimension_numbers<[1], [0], [0], [1], [0, 0, 1, 1], [], []>} : vector<1x16xf32>, vector<16x32xf32>, vector<1x32xf32> -> vector<1x32xf32>
    %174 = arith.addf %6, %173 : vector<1x32xf32>
    %175 = vector.extract_strided_slice %169 {offsets = [1, 0], sizes = [1, 16], strides = [1, 1]} : vector<2x16xf32> to vector<1x16xf32>
    %c1_192 = arith.constant 1 : index
    %c0_193 = arith.constant 0 : index
    %c0_194 = arith.constant 0 : index
    %176 = vector.load %arg20[%c1_192, %c0_193, %c0_194] : memref<2x16x32xf32, #tpu.memory_space<vmem>>, vector<1x16x32xf32>
    %177 = vector.shape_cast %176 : vector<1x16x32xf32> to vector<16x32xf32>
    %cst_195 = arith.constant dense<0.000000e+00> : vector<1x32xf32>
    %178 = tpu.matmul %175, %177, %cst_195 {dimension_numbers = #tpu.dot_dimension_numbers<[1], [0], [0], [1], [0, 0, 1, 1], [], []>} : vector<1x16xf32>, vector<16x32xf32>, vector<1x32xf32> -> vector<1x32xf32>
    %179 = arith.addf %174, %178 : vector<1x32xf32>
    %cst_196 = arith.constant 0.000000e+00 : f32
    %180 = vector.broadcast %cst_196 : f32 to vector<1x32xf32>
    %181 = arith.maximumf %179, %180 : vector<1x32xf32>
    %cst_197 = arith.constant dense<0.000000e+00> : vector<1x6xf32>
    %182 = tpu.matmul %181, %7, %cst_197 {dimension_numbers = #tpu.dot_dimension_numbers<[1], [0], [0], [1], [0, 0, 1, 1], [], []>} : vector<1x32xf32>, vector<32x6xf32>, vector<1x6xf32> -> vector<1x6xf32>
    %183 = arith.addf %182, %8 : vector<1x6xf32>
    %184 = vector.extract_strided_slice %183 {offsets = [0, 0], sizes = [1, 1], strides = [1, 1]} : vector<1x6xf32> to vector<1x1xf32>
    %185 = vector.extract_strided_slice %183 {offsets = [0, 1], sizes = [1, 1], strides = [1, 1]} : vector<1x6xf32> to vector<1x1xf32>
    %186 = vector.extract_strided_slice %183 {offsets = [0, 2], sizes = [1, 1], strides = [1, 1]} : vector<1x6xf32> to vector<1x1xf32>
    %187 = vector.extract_strided_slice %183 {offsets = [0, 3], sizes = [1, 1], strides = [1, 1]} : vector<1x6xf32> to vector<1x1xf32>
    %188 = vector.extract_strided_slice %183 {offsets = [0, 4], sizes = [1, 1], strides = [1, 1]} : vector<1x6xf32> to vector<1x1xf32>
    %189 = vector.extract_strided_slice %183 {offsets = [0, 5], sizes = [1, 1], strides = [1, 1]} : vector<1x6xf32> to vector<1x1xf32>
    %190 = vector.broadcast %184 : vector<1x1xf32> to vector<1x256xf32>
    %191 = arith.mulf %190, %1 : vector<1x256xf32>
    %192 = vector.broadcast %185 : vector<1x1xf32> to vector<1x256xf32>
    %193 = arith.mulf %192, %2 : vector<1x256xf32>
    %194 = arith.addf %191, %193 : vector<1x256xf32>
    %195 = vector.broadcast %186 : vector<1x1xf32> to vector<1x256xf32>
    %196 = arith.addf %194, %195 : vector<1x256xf32>
    %197 = vector.broadcast %187 : vector<1x1xf32> to vector<1x256xf32>
    %198 = arith.mulf %197, %1 : vector<1x256xf32>
    %199 = vector.broadcast %188 : vector<1x1xf32> to vector<1x256xf32>
    %200 = arith.mulf %199, %2 : vector<1x256xf32>
    %201 = arith.addf %198, %200 : vector<1x256xf32>
    %202 = vector.broadcast %189 : vector<1x1xf32> to vector<1x256xf32>
    %203 = arith.addf %201, %202 : vector<1x256xf32>
    %cst_198 = arith.constant 1.000000e+00 : f32
    %204 = vector.broadcast %cst_198 : f32 to vector<1x256xf32>
    %205 = arith.addf %196, %204 : vector<1x256xf32>
    %cst_199 = arith.constant 1.600000e+01 : f32
    %206 = vector.broadcast %cst_199 : f32 to vector<1x256xf32>
    %207 = arith.mulf %205, %206 : vector<1x256xf32>
    %cst_200 = arith.constant 1.000000e+00 : f32
    %208 = vector.broadcast %cst_200 : f32 to vector<1x256xf32>
    %209 = arith.subf %207, %208 : vector<1x256xf32>
    %cst_201 = arith.constant 5.000000e-01 : f32
    %210 = vector.broadcast %cst_201 : f32 to vector<1x256xf32>
    %211 = arith.mulf %209, %210 : vector<1x256xf32>
    %cst_202 = arith.constant 1.000000e+00 : f32
    %212 = vector.broadcast %cst_202 : f32 to vector<1x256xf32>
    %213 = arith.addf %203, %212 : vector<1x256xf32>
    %cst_203 = arith.constant 1.600000e+01 : f32
    %214 = vector.broadcast %cst_203 : f32 to vector<1x256xf32>
    %215 = arith.mulf %213, %214 : vector<1x256xf32>
    %cst_204 = arith.constant 1.000000e+00 : f32
    %216 = vector.broadcast %cst_204 : f32 to vector<1x256xf32>
    %217 = arith.subf %215, %216 : vector<1x256xf32>
    %cst_205 = arith.constant 5.000000e-01 : f32
    %218 = vector.broadcast %cst_205 : f32 to vector<1x256xf32>
    %219 = arith.mulf %217, %218 : vector<1x256xf32>
    %220 = math.floor %211 : vector<1x256xf32>
    %221 = math.floor %219 : vector<1x256xf32>
    %cst_206 = arith.constant 1.000000e+00 : f32
    %222 = vector.broadcast %cst_206 : f32 to vector<1x256xf32>
    %223 = arith.addf %220, %222 : vector<1x256xf32>
    %cst_207 = arith.constant 1.000000e+00 : f32
    %224 = vector.broadcast %cst_207 : f32 to vector<1x256xf32>
    %225 = arith.addf %221, %224 : vector<1x256xf32>
    %226 = arith.subf %211, %220 : vector<1x256xf32>
    %cst_208 = arith.constant 1.000000e+00 : f32
    %227 = vector.broadcast %cst_208 : f32 to vector<1x256xf32>
    %228 = arith.subf %227, %226 : vector<1x256xf32>
    %229 = arith.subf %219, %221 : vector<1x256xf32>
    %cst_209 = arith.constant 1.000000e+00 : f32
    %230 = vector.broadcast %cst_209 : f32 to vector<1x256xf32>
    %231 = arith.subf %230, %229 : vector<1x256xf32>
    %cst_210 = arith.constant 0.000000e+00 : f32
    %232 = vector.broadcast %cst_210 : f32 to vector<1x256xf32>
    %233 = arith.cmpf oge, %220, %232 : vector<1x256xf32>
    %cst_211 = arith.constant 1.500000e+01 : f32
    %234 = vector.broadcast %cst_211 : f32 to vector<1x256xf32>
    %235 = arith.cmpf ole, %220, %234 : vector<1x256xf32>
    %236 = arith.andi %233, %235 : vector<1x256xi1>
    %cst_212 = arith.constant 0.000000e+00 : f32
    %237 = vector.broadcast %cst_212 : f32 to vector<1x256xf32>
    %238 = arith.select %236, %228, %237 : vector<1x256xi1>, vector<1x256xf32>
    %cst_213 = arith.constant 0.000000e+00 : f32
    %cst_214 = arith.constant 1.500000e+01 : f32
    %239 = vector.broadcast %cst_213 : f32 to vector<1x256xf32>
    %240 = arith.maximumf %239, %220 : vector<1x256xf32>
    %241 = vector.broadcast %cst_214 : f32 to vector<1x256xf32>
    %242 = arith.minimumf %241, %240 : vector<1x256xf32>
    %243 = arith.fptosi %242 : vector<1x256xf32> to vector<1x256xi32>
    %cst_215 = arith.constant 0.000000e+00 : f32
    %244 = vector.broadcast %cst_215 : f32 to vector<1x256xf32>
    %245 = arith.cmpf oge, %223, %244 : vector<1x256xf32>
    %cst_216 = arith.constant 1.500000e+01 : f32
    %246 = vector.broadcast %cst_216 : f32 to vector<1x256xf32>
    %247 = arith.cmpf ole, %223, %246 : vector<1x256xf32>
    %248 = arith.andi %245, %247 : vector<1x256xi1>
    %cst_217 = arith.constant 0.000000e+00 : f32
    %249 = vector.broadcast %cst_217 : f32 to vector<1x256xf32>
    %250 = arith.select %248, %226, %249 : vector<1x256xi1>, vector<1x256xf32>
    %cst_218 = arith.constant 0.000000e+00 : f32
    %cst_219 = arith.constant 1.500000e+01 : f32
    %251 = vector.broadcast %cst_218 : f32 to vector<1x256xf32>
    %252 = arith.maximumf %251, %223 : vector<1x256xf32>
    %253 = vector.broadcast %cst_219 : f32 to vector<1x256xf32>
    %254 = arith.minimumf %253, %252 : vector<1x256xf32>
    %255 = arith.fptosi %254 : vector<1x256xf32> to vector<1x256xi32>
    %cst_220 = arith.constant 0.000000e+00 : f32
    %256 = vector.broadcast %cst_220 : f32 to vector<1x256xf32>
    %257 = arith.cmpf oge, %221, %256 : vector<1x256xf32>
    %cst_221 = arith.constant 1.500000e+01 : f32
    %258 = vector.broadcast %cst_221 : f32 to vector<1x256xf32>
    %259 = arith.cmpf ole, %221, %258 : vector<1x256xf32>
    %260 = arith.andi %257, %259 : vector<1x256xi1>
    %cst_222 = arith.constant 0.000000e+00 : f32
    %261 = vector.broadcast %cst_222 : f32 to vector<1x256xf32>
    %262 = arith.select %260, %231, %261 : vector<1x256xi1>, vector<1x256xf32>
    %cst_223 = arith.constant 0.000000e+00 : f32
    %cst_224 = arith.constant 1.500000e+01 : f32
    %263 = vector.broadcast %cst_223 : f32 to vector<1x256xf32>
    %264 = arith.maximumf %263, %221 : vector<1x256xf32>
    %265 = vector.broadcast %cst_224 : f32 to vector<1x256xf32>
    %266 = arith.minimumf %265, %264 : vector<1x256xf32>
    %267 = arith.fptosi %266 : vector<1x256xf32> to vector<1x256xi32>
    %cst_225 = arith.constant 0.000000e+00 : f32
    %268 = vector.broadcast %cst_225 : f32 to vector<1x256xf32>
    %269 = arith.cmpf oge, %225, %268 : vector<1x256xf32>
    %cst_226 = arith.constant 1.500000e+01 : f32
    %270 = vector.broadcast %cst_226 : f32 to vector<1x256xf32>
    %271 = arith.cmpf ole, %225, %270 : vector<1x256xf32>
    %272 = arith.andi %269, %271 : vector<1x256xi1>
    %cst_227 = arith.constant 0.000000e+00 : f32
    %273 = vector.broadcast %cst_227 : f32 to vector<1x256xf32>
    %274 = arith.select %272, %229, %273 : vector<1x256xi1>, vector<1x256xf32>
    %cst_228 = arith.constant 0.000000e+00 : f32
    %cst_229 = arith.constant 1.500000e+01 : f32
    %275 = vector.broadcast %cst_228 : f32 to vector<1x256xf32>
    %276 = arith.maximumf %275, %225 : vector<1x256xf32>
    %277 = vector.broadcast %cst_229 : f32 to vector<1x256xf32>
    %278 = arith.minimumf %277, %276 : vector<1x256xf32>
    %279 = arith.fptosi %278 : vector<1x256xf32> to vector<1x256xi32>
    %280 = vector.broadcast %3 : vector<16x1xi32> to vector<16x256xi32>
    %281 = vector.broadcast %243 : vector<1x256xi32> to vector<16x256xi32>
    %282 = arith.cmpi eq, %280, %281 : vector<16x256xi32>
    %cst_230 = arith.constant 0.000000e+00 : f32
    %283 = vector.shape_cast %238 : vector<1x256xf32> to vector<1x256xf32>
    %284 = vector.broadcast %283 : vector<1x256xf32> to vector<16x256xf32>
    %285 = vector.broadcast %cst_230 : f32 to vector<16x256xf32>
    %286 = arith.select %282, %284, %285 : vector<16x256xi1>, vector<16x256xf32>
    %287 = vector.broadcast %3 : vector<16x1xi32> to vector<16x256xi32>
    %288 = vector.broadcast %255 : vector<1x256xi32> to vector<16x256xi32>
    %289 = arith.cmpi eq, %287, %288 : vector<16x256xi32>
    %cst_231 = arith.constant 0.000000e+00 : f32
    %290 = vector.shape_cast %250 : vector<1x256xf32> to vector<1x256xf32>
    %291 = vector.broadcast %290 : vector<1x256xf32> to vector<16x256xf32>
    %292 = vector.broadcast %cst_231 : f32 to vector<16x256xf32>
    %293 = arith.select %289, %291, %292 : vector<16x256xi1>, vector<16x256xf32>
    %294 = arith.addf %286, %293 : vector<16x256xf32>
    %295 = vector.broadcast %4 : vector<64x1xi32> to vector<64x256xi32>
    %296 = vector.broadcast %267 : vector<1x256xi32> to vector<64x256xi32>
    %297 = arith.cmpi eq, %295, %296 : vector<64x256xi32>
    %cst_232 = arith.constant 0.000000e+00 : f32
    %298 = vector.shape_cast %262 : vector<1x256xf32> to vector<1x256xf32>
    %299 = vector.broadcast %298 : vector<1x256xf32> to vector<64x256xf32>
    %300 = vector.broadcast %cst_232 : f32 to vector<64x256xf32>
    %301 = arith.select %297, %299, %300 : vector<64x256xi1>, vector<64x256xf32>
    %302 = vector.broadcast %4 : vector<64x1xi32> to vector<64x256xi32>
    %303 = vector.broadcast %279 : vector<1x256xi32> to vector<64x256xi32>
    %304 = arith.cmpi eq, %302, %303 : vector<64x256xi32>
    %cst_233 = arith.constant 0.000000e+00 : f32
    %305 = vector.shape_cast %274 : vector<1x256xf32> to vector<1x256xf32>
    %306 = vector.broadcast %305 : vector<1x256xf32> to vector<64x256xf32>
    %307 = vector.broadcast %cst_233 : f32 to vector<64x256xf32>
    %308 = arith.select %304, %306, %307 : vector<64x256xi1>, vector<64x256xf32>
    %309 = arith.addf %301, %308 : vector<64x256xf32>
    %c0_234 = arith.constant 0 : index
    %c0_235 = arith.constant 0 : index
    %c0_236 = arith.constant 0 : index
    %310 = vector.load %arg2[%c0_234, %c0_235, %c0_236] : memref<1x64x16xf32, #tpu.memory_space<vmem>>, vector<1x64x16xf32>
    %311 = vector.shape_cast %310 : vector<1x64x16xf32> to vector<64x16xf32>
    %cst_237 = arith.constant dense<0.000000e+00> : vector<64x256xf32>
    %312 = tpu.matmul %311, %294, %cst_237 {dimension_numbers = #tpu.dot_dimension_numbers<[1], [0], [0], [1], [0, 0, 1, 1], [], []>} : vector<64x16xf32>, vector<16x256xf32>, vector<64x256xf32> -> vector<64x256xf32>
    %313 = arith.mulf %309, %312 : vector<64x256xf32>
    %cst_238 = arith.constant dense<0.000000e+00> : vector<4x256xf32>
    %314 = tpu.matmul %5, %313, %cst_238 {dimension_numbers = #tpu.dot_dimension_numbers<[1], [0], [0], [1], [0, 0, 1, 1], [], []>} : vector<4x64xf32>, vector<64x256xf32>, vector<4x256xf32> -> vector<4x256xf32>
    %c0_239 = arith.constant 0 : index
    %c0_240 = arith.constant 0 : index
    %c0_241 = arith.constant 0 : index
    %315 = vector.load %arg28[%c0_239, %c0_240, %c0_241] : memref<1x4x256xf32, #tpu.memory_space<vmem>>, vector<1x4x256xf32>
    %316 = vector.shape_cast %315 : vector<1x4x256xf32> to vector<4x256xf32>
    %317 = vector.shape_cast %314 : vector<4x256xf32> to vector<1x4x256xf32>
    tpu.vector_store %arg28[%c0_239, %c0_240, %c0_241], %317 {strides = array<i32>} : memref<1x4x256xf32, #tpu.memory_space<vmem>>, vector<1x4x256xf32>,
    return
  }
  func.func @transform_0(%arg0: i32) -> (i32, i32, i32) {
    %c0_i32 = arith.constant 0 : i32
    %c0_i32_0 = arith.constant 0 : i32
    %c0_i32_1 = arith.constant 0 : i32
    return %arg0, %c0_i32, %c0_i32_0 : i32, i32, i32
  }
  func.func @transform_1(%arg0: i32) -> (i32, i32, i32) {
    %c0_i32 = arith.constant 0 : i32
    %c0_i32_0 = arith.constant 0 : i32
    %c0_i32_1 = arith.constant 0 : i32
    return %arg0, %c0_i32, %c0_i32_0 : i32, i32, i32
  }
  func.func @transform_2(%arg0: i32) -> (i32, i32, i32) {
    %c0_i32 = arith.constant 0 : i32
    %c0_i32_0 = arith.constant 0 : i32
    %c0_i32_1 = arith.constant 0 : i32
    %c0_i32_2 = arith.constant 0 : i32
    return %c0_i32, %c0_i32_0, %c0_i32_1 : i32, i32, i32
  }
  func.func @transform_3(%arg0: i32) -> (i32, i32, i32) {
    %c0_i32 = arith.constant 0 : i32
    %c0_i32_0 = arith.constant 0 : i32
    %c0_i32_1 = arith.constant 0 : i32
    %c0_i32_2 = arith.constant 0 : i32
    return %c0_i32, %c0_i32_0, %c0_i32_1 : i32, i32, i32
  }
  func.func @transform_4(%arg0: i32) -> (i32, i32, i32) {
    %c0_i32 = arith.constant 0 : i32
    %c0_i32_0 = arith.constant 0 : i32
    %c0_i32_1 = arith.constant 0 : i32
    %c0_i32_2 = arith.constant 0 : i32
    return %c0_i32, %c0_i32_0, %c0_i32_1 : i32, i32, i32
  }
  func.func @transform_5(%arg0: i32) -> (i32, i32, i32) {
    %c0_i32 = arith.constant 0 : i32
    %c0_i32_0 = arith.constant 0 : i32
    %c0_i32_1 = arith.constant 0 : i32
    %c0_i32_2 = arith.constant 0 : i32
    return %c0_i32, %c0_i32_0, %c0_i32_1 : i32, i32, i32
  }
  func.func @transform_6(%arg0: i32) -> (i32, i32, i32) {
    %c0_i32 = arith.constant 0 : i32
    %c0_i32_0 = arith.constant 0 : i32
    %c0_i32_1 = arith.constant 0 : i32
    %c0_i32_2 = arith.constant 0 : i32
    return %c0_i32, %c0_i32_0, %c0_i32_1 : i32, i32, i32
  }
  func.func @transform_7(%arg0: i32) -> (i32, i32, i32) {
    %c0_i32 = arith.constant 0 : i32
    %c0_i32_0 = arith.constant 0 : i32
    %c0_i32_1 = arith.constant 0 : i32
    %c0_i32_2 = arith.constant 0 : i32
    return %c0_i32, %c0_i32_0, %c0_i32_1 : i32, i32, i32
  }
  func.func @transform_8(%arg0: i32) -> (i32, i32, i32) {
    %c0_i32 = arith.constant 0 : i32
    %c0_i32_0 = arith.constant 0 : i32
    %c0_i32_1 = arith.constant 0 : i32
    %c0_i32_2 = arith.constant 0 : i32
    return %c0_i32, %c0_i32_0, %c0_i32_1 : i32, i32, i32
  }
  func.func @transform_9(%arg0: i32) -> (i32, i32, i32) {
    %c0_i32 = arith.constant 0 : i32
    %c0_i32_0 = arith.constant 0 : i32
    %c0_i32_1 = arith.constant 0 : i32
    %c0_i32_2 = arith.constant 0 : i32
    return %c0_i32, %c0_i32_0, %c0_i32_1 : i32, i32, i32
  }
  func.func @transform_10(%arg0: i32) -> (i32, i32, i32) {
    %c0_i32 = arith.constant 0 : i32
    %c0_i32_0 = arith.constant 0 : i32
    %c0_i32_1 = arith.constant 0 : i32
    %c0_i32_2 = arith.constant 0 : i32
    return %c0_i32, %c0_i32_0, %c0_i32_1 : i32, i32, i32
  }
  func.func @transform_11(%arg0: i32) -> (i32, i32, i32) {
    %c0_i32 = arith.constant 0 : i32
    %c0_i32_0 = arith.constant 0 : i32
    %c0_i32_1 = arith.constant 0 : i32
    %c0_i32_2 = arith.constant 0 : i32
    return %c0_i32, %c0_i32_0, %c0_i32_1 : i32, i32, i32
  }
  func.func @transform_12(%arg0: i32) -> (i32, i32) {
    %c0_i32 = arith.constant 0 : i32
    %c0_i32_0 = arith.constant 0 : i32
    %c0_i32_1 = arith.constant 0 : i32
    return %c0_i32, %c0_i32_0 : i32, i32
  }
  func.func @transform_13(%arg0: i32) -> (i32, i32, i32) {
    %c0_i32 = arith.constant 0 : i32
    %c0_i32_0 = arith.constant 0 : i32
    %c0_i32_1 = arith.constant 0 : i32
    %c0_i32_2 = arith.constant 0 : i32
    return %c0_i32, %c0_i32_0, %c0_i32_1 : i32, i32, i32
  }
  func.func @transform_14(%arg0: i32) -> (i32, i32, i32) {
    %c0_i32 = arith.constant 0 : i32
    %c0_i32_0 = arith.constant 0 : i32
    %c0_i32_1 = arith.constant 0 : i32
    %c0_i32_2 = arith.constant 0 : i32
    return %c0_i32, %c0_i32_0, %c0_i32_1 : i32, i32, i32
  }
  func.func @transform_15(%arg0: i32) -> (i32, i32) {
    %c0_i32 = arith.constant 0 : i32
    %c0_i32_0 = arith.constant 0 : i32
    %c0_i32_1 = arith.constant 0 : i32
    return %c0_i32, %c0_i32_0 : i32, i32
  }
  func.func @transform_16(%arg0: i32) -> (i32, i32, i32) {
    %c0_i32 = arith.constant 0 : i32
    %c0_i32_0 = arith.constant 0 : i32
    %c0_i32_1 = arith.constant 0 : i32
    %c0_i32_2 = arith.constant 0 : i32
    return %c0_i32, %c0_i32_0, %c0_i32_1 : i32, i32, i32
  }
  func.func @transform_17(%arg0: i32) -> (i32, i32, i32) {
    %c0_i32 = arith.constant 0 : i32
    %c0_i32_0 = arith.constant 0 : i32
    %c0_i32_1 = arith.constant 0 : i32
    %c0_i32_2 = arith.constant 0 : i32
    return %c0_i32, %c0_i32_0, %c0_i32_1 : i32, i32, i32
  }
  func.func @transform_18(%arg0: i32) -> (i32, i32) {
    %c0_i32 = arith.constant 0 : i32
    %c0_i32_0 = arith.constant 0 : i32
    %c0_i32_1 = arith.constant 0 : i32
    return %c0_i32, %c0_i32_0 : i32, i32
  }
  func.func @transform_19(%arg0: i32) -> (i32, i32, i32) {
    %c0_i32 = arith.constant 0 : i32
    %c0_i32_0 = arith.constant 0 : i32
    %c0_i32_1 = arith.constant 0 : i32
    %c0_i32_2 = arith.constant 0 : i32
    return %c0_i32, %c0_i32_0, %c0_i32_1 : i32, i32, i32
  }
  func.func @transform_20(%arg0: i32) -> (i32, i32) {
    %c0_i32 = arith.constant 0 : i32
    %c0_i32_0 = arith.constant 0 : i32
    %c0_i32_1 = arith.constant 0 : i32
    return %c0_i32, %c0_i32_0 : i32, i32
  }
  func.func @transform_21(%arg0: i32) -> (i32, i32) {
    %c0_i32 = arith.constant 0 : i32
    %c0_i32_0 = arith.constant 0 : i32
    %c0_i32_1 = arith.constant 0 : i32
    return %c0_i32, %c0_i32_0 : i32, i32
  }
  func.func @transform_22(%arg0: i32) -> (i32, i32) {
    %c0_i32 = arith.constant 0 : i32
    %c0_i32_0 = arith.constant 0 : i32
    %c0_i32_1 = arith.constant 0 : i32
    return %c0_i32, %c0_i32_0 : i32, i32
  }
  func.func @transform_23(%arg0: i32) -> (i32, i32) {
    %c0_i32 = arith.constant 0 : i32
    %c0_i32_0 = arith.constant 0 : i32
    %c0_i32_1 = arith.constant 0 : i32
    return %c0_i32, %c0_i32_0 : i32, i32
  }
  func.func @transform_24(%arg0: i32) -> (i32, i32) {
    %c0_i32 = arith.constant 0 : i32
    %c0_i32_0 = arith.constant 0 : i32
    %c0_i32_1 = arith.constant 0 : i32
    return %c0_i32, %c0_i32_0 : i32, i32
  }
  func.func @transform_25(%arg0: i32) -> (i32, i32) {
    %c0_i32 = arith.constant 0 : i32
    %c0_i32_0 = arith.constant 0 : i32
    %c0_i32_1 = arith.constant 0 : i32
    return %c0_i32, %c0_i32_0 : i32, i32
  }
  func.func @transform_26(%arg0: i32) -> (i32, i32) {
    %c0_i32 = arith.constant 0 : i32
    %c0_i32_0 = arith.constant 0 : i32
    %c0_i32_1 = arith.constant 0 : i32
    return %c0_i32, %c0_i32_0 : i32, i32
  }
  func.func @transform_27(%arg0: i32) -> (i32, i32, i32) {
    %c0_i32 = arith.constant 0 : i32
    %c0_i32_0 = arith.constant 0 : i32
    %c0_i32_1 = arith.constant 0 : i32
    return %arg0, %c0_i32, %c0_i32_0 : i32, i32, i32
  }
}

</mosaic_0001>

<bundles_post_ra>
// kernel: tile.19
= control target key start
LH: loop header
LB: loop body
LE: loop exit
PB: predicated region body
PF: predicated region fallthrough
CT: control target
= control target key end

     0   :  { %s67_s10 = smov 56   ;;  %s68_s11 = smov 40   ;;  %vm3_vm0 = vcmask 64512   ;;  %vm9_vm1 = vcmask 523712   ;;  %vm15_vm2 = vcmask 458112   ;;  %vm21_vm3 = vcmask 392512   ;;  %s111_s0 = inlined_call_operand.vmem [shape: f32[8,8], index: 0, kind: input, shape index: {}]   ;;  %s112_s1 = inlined_call_operand.vmem [shape: f32[1,64], index: 1, kind: output, shape index: {}]  }
   0x1   :  { %v53_v0 = vld [vmem:[%s111_s0 + $0x7] sm:$0x1]   ;;  %v55_v1 = vld [vmem:[%s111_s0 + $0x5] sm:$0x1]   ;;  %v57_v2 = vld [vmem:[%s111_s0 + $0x3] sm:$0x1]  }
   0x2   :  { %7 = vrot.lane.b32.xlu0 %v53_v0, %s67_s10  ;;  %19 = vrot.lane.b32.xlu1 %v55_v1, %s68_s11  ;;  %s69_s14 = smov 24   ;;  %v54_v3 = vld [vmem:[%s111_s0 + $0x6] sm:$0x1]   ;;  %v56_v4 = vld [vmem:[%s111_s0 + $0x4] sm:$0x1]   ;;  %s70_s21 = smov 48  }
   0x3   :  { %31 = vrot.lane.b32.xlu2 %v57_v2, %s69_s14  ;;  %v58_v5 = vld [vmem:[%s111_s0 + $0x2] sm:$0x1]   ;;  %s71_s22 = smov 32   ;;  %s72_s23 = smov 16   ;;  %v59_v6 = vld [vmem:[%s111_s0 + $0x1] sm:$0x1]  }
   0x4   :  { %s73_s26 = smov 8   ;;  %v2_v7 = vld [vmem:[%s111_s0] sm:$0x1]   ;;  %vm27_vm4 = vcmask 326912   ;;  %vm33_vm5 = vcmask 261312   ;;  %vm39_vm6 = vcmask 195712  }
   0x5   :  { %4 = vst.msk [vmem:[#allocation0] sm:$0x1] %vm3_vm0, %v2_v7   ;;  %vm45_vm7 = vcmask 130112  }
   0xa   :  { %13 = vrot.lane.b32.xlu0 %v54_v3, %s70_s21  ;;  %25 = vrot.lane.b32.xlu1 %v56_v4, %s71_s22 }
   0xb   :  { %37 = vrot.lane.b32.xlu2 %v58_v5, %s72_s23 }
  0x12   :  { %43 = vrot.lane.b32.xlu0 %v59_v6, %s73_s26 }
  0x5d   :  { %v32_v8 = vpop.permute.xlu2 %31  }
  0x65   :  { %v38_v9 = vpop.permute.xlu2 %37  }
  0x74   :  { %v8_v10 = vpop.permute.xlu0 %7   ;;  %v20_v11 = vpop.permute.xlu1 %19  }
  0x75   :  { %10 = vst.msk [vmem:[#allocation0] sm:$0x1] %vm9_vm1, %v8_v10  }
  0x7c   :  { %v14_v12 = vpop.permute.xlu0 %13   ;;  %v26_v13 = vpop.permute.xlu1 %25  }
  0x7d   :  { %16 = vst.msk [vmem:[#allocation0] sm:$0x1] %vm15_vm2, %v14_v12  }
  0x7e   :  { %22 = vst.msk [vmem:[#allocation0] sm:$0x1] %vm21_vm3, %v20_v11  }
  0x7f   :  { %28 = vst.msk [vmem:[#allocation0] sm:$0x1] %vm27_vm4, %v26_v13  }
  0x80   :  { %34 = vst.msk [vmem:[#allocation0] sm:$0x1] %vm33_vm5, %v32_v8  }
  0x81   :  { %40 = vst.msk [vmem:[#allocation0] sm:$0x1] %vm39_vm6, %v38_v9  }
  0x84   :  { %v44_v14 = vpop.permute.xlu0 %43  }
  0x85   :  { %46 = vst.msk [vmem:[#allocation0] sm:$0x1] %vm45_vm7, %v44_v14  }
  0x8c   :  { %v49_v15 = vld [vmem:[#allocation0] sm:$0x1] }
  0x8d   :  { %52 = vst [vmem:[%s112_s1] sm:$0x1] %v49_v15 }

// kernel: tile.18
= control target key start
LH: loop header
LB: loop body
LE: loop exit
PB: predicated region body
PF: predicated region fallthrough
CT: control target
= control target key end

     0   :  { %s22_s0 = inlined_call_operand.vmem [shape: f32[8], index: 0, kind: input, shape index: {}]   ;;  %s23_s1 = inlined_call_operand.vmem [shape: f32[8,8], index: 1, kind: output, shape index: {}]  }
   0x1   :  { %v4_v0 = vld [vmem:[%s22_s0] ss:$0 sm:$0xff] }
   0x2   :  { %5 = vst [vmem:[%s23_s1] sm:$0xff] %v4_v0 }

// kernel: tile.23
= control target key start
LH: loop header
LB: loop body
LE: loop exit
PB: predicated region body
PF: predicated region fallthrough
CT: control target
= control target key end

     0   :  { %s22_s0 = inlined_call_operand.vmem [shape: f32[8], index: 0, kind: input, shape index: {}]   ;;  %s23_s1 = inlined_call_operand.vmem [shape: f32[4,8], index: 1, kind: output, shape index: {}]  }
   0x1   :  { %v4_v0 = vld [vmem:[%s22_s0] ss:$0 sm:$0xff] }
   0x2   :  { %5 = vst [vmem:[%s23_s1] sm:$0xf] %v4_v0 }

// kernel: tile.24
= control target key start
LH: loop header
LB: loop body
LE: loop exit
PB: predicated region body
PF: predicated region fallthrough
CT: control target
= control target key end

     0   :  { %s37_s8 = smov 8   ;;  %s38_s9 = smov 16   ;;  %vm7_vm0 = vcmask 64512   ;;  %vm13_vm1 = vcmask 261312   ;;  %vm19_vm2 = vcmask 195712   ;;  %vm25_vm3 = vcmask 130112   ;;  %s55_s0 = inlined_call_operand.vmem [shape: f32[4,8], index: 0, kind: input, shape index: {}]   ;;  %s56_s1 = inlined_call_operand.vmem [shape: f32[1,32], index: 1, kind: output, shape index: {}]  }
   0x1   :  { %v4_v0 = vld [vmem:[%s55_s0] sm:$0xf]  ;;  %s36_s0 = smov 24  }
   0x2   :  { %5 = vst [vmem:[#allocation1] sm:$0xf] %v4_v0 }
   0x9   :  { %v10_v1 = vld [vmem:[#allocation1 + $0x3] sm:$0x1]   ;;  %v22_v2 = vld [vmem:[#allocation1 + $0x1] sm:$0x1]   ;;  %v16_v3 = vld [vmem:[#allocation1 + $0x2] sm:$0x1]  }
   0xa   :  { %11 = vrot.lane.b32.xlu0 %v10_v1, %s36_s0  ;;  %23 = vrot.lane.b32.xlu1 %v22_v2, %s37_s8  ;;  %v6_v4 = vld [vmem:[#allocation1] sm:$0x1]  }
   0xb   :  { %8 = vst.msk [vmem:[#allocation0] sm:$0x1] %vm7_vm0, %v6_v4  }
  0x12   :  { %17 = vrot.lane.b32.xlu0 %v16_v3, %s38_s9 }
  0x7c   :  { %v12_v5 = vpop.permute.xlu0 %11   ;;  %v24_v6 = vpop.permute.xlu1 %23  }
  0x7d   :  { %14 = vst.msk [vmem:[#allocation0] sm:$0x1] %vm13_vm1, %v12_v5  }
  0x84   :  { %v18_v7 = vpop.permute.xlu0 %17  }
  0x85   :  { %20 = vst.msk [vmem:[#allocation0] sm:$0x1] %vm19_vm2, %v18_v7  }
  0x86   :  { %26 = vst.msk [vmem:[#allocation0] sm:$0x1] %vm25_vm3, %v24_v6  }
  0x8d   :  { %v29_v8 = vld [vmem:[#allocation0] sm:$0x1] }
  0x8e   :  { %32 = vst [vmem:[%s56_s1] sm:$0x1] %v29_v8 }

// kernel: stn_forward.1
= control target key start
LH: loop header
LB: loop body
LE: loop exit
PB: predicated region body
PF: predicated region fallthrough
CT: control target
= control target key end

     0   :  { %s3777_s0 = inlined_call_operand.vmem [shape: f32[2,16,64], index: 0, kind: input, shape index: {}]   ;;  %s3778_s1 = inlined_call_operand.vmem [shape: f32[2,64,16], index: 1, kind: input, shape index: {}]   ;;  %s3779_s2 = inlined_call_operand.vmem [shape: f32[2,8,16], index: 2, kind: input, shape index: {}]   ;;  %s3780_s3 = inlined_call_operand.vmem [shape: f32[2,64,32], index: 3, kind: input, shape index: {}]   ;;  %s3781_s4 = inlined_call_operand.vmem [shape: f32[2,4,8], index: 4, kind: input, shape index: {}]   ;;  %s3782_s5 = inlined_call_operand.vmem [shape: f32[2,64,32], index: 5, kind: input, shape index: {}]   ;;  %s3783_s6 = inlined_call_operand.vmem [shape: f32[2,2,4], index: 6, kind: input, shape index: {}, may-alias: {6,8}]   ;;  %s3784_s7 = inlined_call_operand.vmem [shape: f32[2,32,16], index: 7, kind: input, shape index: {}, may-alias: {7,9}]   ;;  %s3785_s8 = inlined_call_operand.vmem [shape: f32[2,2,4], index: 8, kind: input, shape index: {}, may-alias: {6,8}]   ;;  %s3786_s9 = inlined_call_operand.vmem [shape: f32[2,32,16], index: 9, kind: input, shape index: {}, may-alias: {7,9}]   ;;  %s3787_s10 = inlined_call_operand.vmem [shape: f32[5,8,8], index: 10, kind: input, shape index: {}]   ;;  %s3788_s11 = inlined_call_operand.vmem [shape: f32[5,32,64], index: 11, kind: input, shape index: {}]   ;;  %s3789_s12 = inlined_call_operand.vmem [shape: f32[1,64], index: 12, kind: input, shape index: {}]   ;;  %s3790_s13 = inlined_call_operand.vmem [shape: f32[5,4,4], index: 13, kind: input, shape index: {}]   ;;  %s3791_s14 = inlined_call_operand.vmem [shape: f32[5,32,32], index: 14, kind: input, shape index: {}]   ;;  %s3792_s15 = inlined_call_operand.vmem [shape: f32[1,32], index: 15, kind: input, shape index: {}]   ;;  %s3793_s16 = inlined_call_operand.vmem [shape: f32[3,4,2], index: 16, kind: input, shape index: {}]   ;;  %s3794_s17 = inlined_call_operand.vmem [shape: f32[3,16,32], index: 17, kind: input, shape index: {}]   ;;  %s3795_s18 = inlined_call_operand.vmem [shape: f32[1,32], index: 18, kind: input, shape index: {}]   ;;  %s3796_s19 = inlined_call_operand.vmem [shape: f32[2,16,32], index: 19, kind: input, shape index: {}]   ;;  %s3797_s20 = inlined_call_operand.vmem [shape: f32[1,32], index: 20, kind: input, shape index: {}]   ;;  %s3798_s21 = inlined_call_operand.vmem [shape: f32[32,6], index: 21, kind: input, shape index: {}]   ;;  %s3799_s22 = inlined_call_operand.vmem [shape: f32[1,6], index: 22, kind: input, shape index: {}]   ;;  %s3800_s23 = inlined_call_operand.vmem [shape: f32[2,256], index: 23, kind: input, shape index: {}]   ;;  %s3801_s24 = inlined_call_operand.vmem [shape: s32[16,1], index: 24, kind: input, shape index: {}]   ;;  %s3802_s25 = inlined_call_operand.vmem [shape: s32[64,1], index: 25, kind: input, shape index: {}]   ;;  %s3803_s26 = inlined_call_operand.vmem [shape: f32[4,64], index: 26, kind: input, shape index: {}]   ;;  %s3804_s27 = inlined_call_operand.vmem [shape: f32[2,4,256], index: 27, kind: output, shape index: {}]  }
   0x1   :  { %3824 = sst [smem:[#allocation3_spill]] %s3777_s0 }
   0x2   :  { %3825 = sst [smem:[#allocation4_spill]] %s3778_s1 }
   0x3   :  { %3826 = sst [smem:[#allocation5_spill]] %s3779_s2 }
   0x4   :  { %3827 = sst [smem:[#allocation6_spill]] %s3780_s3 }
   0x5   :  { %3828 = sst [smem:[#allocation7_spill]] %s3781_s4 }
   0x6   :  { %3829 = sst [smem:[#allocation8_spill]] %s3782_s5 }
   0x7   :  { %3830 = sst [smem:[#allocation9_spill]] %s3783_s6 }
   0x8   :  { %3831 = sst [smem:[#allocation10_spill]] %s3784_s7  ;;  %s3001_s7 = smov 0  }
   0x9   :  { %3832 = sst [smem:[#allocation11_spill]] %s3785_s8 }
   0xa   :  { %3833 = sst [smem:[#allocation12_spill]] %s3786_s9 }
   0xb   :  { %3834 = sst [smem:[#allocation13_spill]] %s3787_s10 }
   0xc   :  { %3835 = sst [smem:[#allocation14_spill]] %s3788_s11 }
   0xd LB: > { %3836 = sst [smem:[#allocation2_spill]] %s2853_s7  ;;  %s2616_s4 = sadd.s32 4294967295, %s2853_s7   ;;  %s2853_s7 = sphi %s3001_s7, %s37_s7  }
   0xe   : > { %p2620_p0 = scmp.ge.s32.totalorder %s2853_s7, 1  ;;  %p747_p1 = scmp.lt.s32.totalorder %s2853_s7, 3 }
  0x10   : > { %p748_p2 = pnand %p2620_p0, %p747_p1 }
  0x11   : > { %p824_p3 = scmp.lt.s32.totalorder (!%p748_p2), %s2616_s4, 1  ;;  %s3837_s9 = sld [smem:[#allocation6_spill]] (!%p748_p2) }
  0x12   : > { %751 = sbr.rel (%p748_p2) target bundleno = 2879 (0xb3f), region = 128  ;;  %s3838_s10 = sld [smem:[#allocation3_spill]] (!%p748_p2) }
  0x13   : > { %s3839_s2 = sld [smem:[#allocation5_spill]] (!%p748_p2) }
  0x14   : > { %s3841_s30 = sld [smem:[#allocation14_spill]] (!%p748_p2) }
  0x15   : > { %s3842_s1 = sld [smem:[#allocation8_spill]] (!%p748_p2) }
  0x16   : > { %s3844_s3 = sld [smem:[#allocation10_spill]] (!%p748_p2) }
  0x17   : > { %v917_v0 = vld [vmem:[%s3837_s9 + $0x38] sm:$0xff]  ;;  %v916_v2 = vld [vmem:[%s3837_s9 + $0x30] sm:$0xff]  ;;  %s3863_s4 = smov (!%p824_p3, %s2616_s4), 1  ;;  %v915_v4 = vld [vmem:[%s3837_s9 + $0x28] sm:$0xff]  ;;  %vm860_vm0 = vcmask 130048   ;;  %vm3823_vm1 = vcmask 523264  }
  0x18   : > { %930 = vmatpush.msra.mxu2 %v917_v0  ;;  %v2638_v1 = vld [vmem:[%s3837_s9 + $0x78] sm:$0xff]  ;;  %v2637_v3 = vld [vmem:[%s3837_s9 + $0x70] sm:$0xff]  ;;  %v2636_v5 = vld [vmem:[%s3837_s9 + $0x68] sm:$0xff]  ;;  %s2784_s8 = sshll.u32 %s3863_s4, 4  ;;  %vm973_vm2 = vcmask 64512   ;;  %vm1031_vm3 = vcmask 261120  }
  0x19   : > { %959 = vmatpush.msra.mxu3 %v2638_v1  ;;  %v914_v6 = vld [vmem:[%s3837_s9 + $0x20] sm:$0xff]  ;;  %s828_s29 = scalar_lea.vmem %s3838_s10, %s2784_s8  ;;  %v2628_v11 = vld [vmem:[%s3839_s2 + $0x8] sm:$0xff]  ;;  %v913_v12 = vld [vmem:[%s3837_s9 + $0x18] sm:$0xff]  ;;  %vm3822_vm4 = vcmask 1043456   ;;  %vm1358_vm5 = vcmask 31744   ;;  %s3845_s5 = sld [smem:[#allocation9_spill]] }
  0x1a   : > { %931 = vmatpush.msra.mxu2 %v916_v2  ;;  %v2635_v7 = vld [vmem:[%s3837_s9 + $0x60] sm:$0xff]  ;;  %v858_v8 = vld [vmem:[%s828_s29 + $0x8] sm:$0xff]  ;;  %v2634_v13 = vld [vmem:[%s3837_s9 + $0x58] sm:$0xff]  ;;  %vm1745_vm6 = vcmask 1041408   ;;  %vm1741_vm7 = vcmask 15360   ;;  %s3846_s10 = sld [smem:[#allocation12_spill]] }
  0x1b   : > { %960 = vmatpush.msra.mxu3 %v2637_v3  ;;  %v857_v9 = vld [vmem:[%s828_s29] sm:$0xff]  ;;  %878 = vmatpush.msra.mxu0 %v858_v8  ;;  %v912_v14 = vld [vmem:[%s3837_s9 + $0x10] sm:$0xff]  ;;  %v911_v16 = vld [vmem:[%s3837_s9 + $0x8] sm:$0xff]  ;;  %s3840_s29 = sld [smem:[#allocation13_spill]]  ;;  %s2786_s7 = sshll.u32 %s3863_s4, 3 }
  0x1c   : > { %932 = vmatpush.msra.mxu2 %v915_v4  ;;  %903 = vmatpush.msra.mxu1 %v858_v8  ;;  %v859_v10 = vld [vmem:[%s3839_s2] sm:$0xff]  ;;  %v2633_v15 = vld [vmem:[%s3837_s9 + $0x50] sm:$0xff]  ;;  %v2632_v17 = vld [vmem:[%s3837_s9 + $0x48] sm:$0xff]  ;;  %s3843_s2 = sld [smem:[#allocation7_spill]] }
  0x1d   : > { %961 = vmatpush.msra.mxu3 %v2636_v5  ;;  %879 = vmatpush.msra.mxu0 %v857_v9  ;;  %v910_v18 = vld [vmem:[%s3837_s9] sm:$0xff]  ;;  %v2646_v28 = vld [vmem:[%s3841_s30 + $0x38] sm:$0xff]  ;;  %v2645_v31 = vld [vmem:[%s3841_s30 + $0x30] sm:$0xff]  ;;  %s3847_s11 = sld [smem:[#allocation11_spill]] }
  0x1e   : > { %933 = vmatpush.msra.mxu2 %v914_v6  ;;  %904 = vmatpush.msra.mxu1 %v857_v9  ;;  %v2631_v19 = vld [vmem:[%s3837_s9 + $0x40] sm:$0xff]  ;;  %v1000_v30 = vld [vmem:[%s3841_s30 + $0x18] sm:$0xff]  ;;  %v999_v32 = vld [vmem:[%s3841_s30 + $0x10] sm:$0xff]  ;;  %s3852_s6 = sld [smem:[#allocation4_spill]] }
  0x1f   : > { %962 = vmatpush.msra.mxu3 %v2635_v7  ;;  %2627 = vmatmul.msk.f32.vlgmr.msra.gmra.mxu0 %vm860_vm0, %v859_v10  ;;  %v2644_v33 = vld [vmem:[%s3841_s30 + $0x28] sm:$0xff]  ;;  %v2643_v35 = vld [vmem:[%s3841_s30 + $0x20] sm:$0xff]  ;;  %v2654_v38 = vld [vmem:[%s3841_s30 + $0x58] sm:$0xff] }
  0x20   : > { %2629 = vmatmul.msk.f32.vlgmr.msra.gmra.mxu1 %vm860_vm0, %v2628_v11  ;;  %934 = vmatpush.msra.mxu2 %v913_v12  ;;  %v998_v34 = vld [vmem:[%s3841_s30 + $0x8] sm:$0xff]  ;;  %v997_v37 = vld [vmem:[%s3841_s30] sm:$0xff]  ;;  %v2653_v39 = vld [vmem:[%s3841_s30 + $0x50] sm:$0xff] }
  0x21   : > { %963 = vmatpush.msra.mxu3 %v2634_v13  ;;  %v972_v26 = vld [vmem:[%s3840_s29] sm:$0xff]  ;;  %v2641_v27 = vld [vmem:[%s3840_s29 + $0x8] sm:$0xff]  ;;  %v2649_v29 = vld [vmem:[%s3840_s29 + $0x10] sm:$0xff] }
  0x22   : > { %935 = vmatpush.msra.mxu2 %v912_v14  ;;  %v2663_v36 = vld [vmem:[%s3840_s29 + $0x20] sm:$0xff]  ;;  %v2652_v40 = vld [vmem:[%s3841_s30 + $0x48] sm:$0xff]  ;;  %v2668_v42 = vld [vmem:[%s3841_s30 + $0x98] sm:$0xff] }
  0x23   : > { %964 = vmatpush.msra.mxu3 %v2633_v15  ;;  %v2651_v41 = vld [vmem:[%s3841_s30 + $0x40] sm:$0xff]  ;;  %v2656_v45 = vld [vmem:[%s3840_s29 + $0x18] sm:$0xff]  ;;  %v2667_v47 = vld [vmem:[%s3841_s30 + $0x90] sm:$0xff] }
  0x24   : > { %936 = vmatpush.msra.mxu2 %v911_v16  ;;  %v2661_v48 = vld [vmem:[%s3841_s30 + $0x78] sm:$0xff]  ;;  %v2666_v49 = vld [vmem:[%s3841_s30 + $0x88] sm:$0xff]  ;;  %v2660_v50 = vld [vmem:[%s3841_s30 + $0x70] sm:$0xff] }
  0x25   : > { %965 = vmatpush.msra.mxu3 %v2632_v17  ;;  %v2665_v51 = vld [vmem:[%s3841_s30 + $0x80] sm:$0xff]  ;;  %v2659_v52 = vld [vmem:[%s3841_s30 + $0x68] sm:$0xff]  ;;  %v1303_v57 = vld [vmem:[%s3842_s1 + $0x38] sm:$0xff] }
  0x26   : > { %937 = vmatpush.msra.mxu2 %v910_v18  ;;  %v2658_v54 = vld [vmem:[%s3841_s30 + $0x60] sm:$0xff]  ;;  %v2681_v58 = vld [vmem:[%s3842_s1 + $0x78] sm:$0xff]  ;;  %v1302_v59 = vld [vmem:[%s3842_s1 + $0x30] sm:$0xff] }
  0x27   : > { %966 = vmatpush.msra.mxu3 %v2631_v19  ;;  %v2680_v60 = vld [vmem:[%s3842_s1 + $0x70] sm:$0xff]  ;;  %v1301_v61 = vld [vmem:[%s3842_s1 + $0x28] sm:$0xff]  ;;  %v1300_v63 = vld [vmem:[%s3842_s1 + $0x20] sm:$0xff] }
  0x28   : > { %v2679_v62 = vld [vmem:[%s3842_s1 + $0x68] sm:$0xff]  ;;  %v2678_v0 = vld [vmem:[%s3842_s1 + $0x60] sm:$0xff]  ;;  %v1299_v1 = vld [vmem:[%s3842_s1 + $0x18] sm:$0xff] }
  0x29   : > { %1123 = vmatpush.msrb.mxu3 %v2654_v38  ;;  %v2677_v2 = vld [vmem:[%s3842_s1 + $0x58] sm:$0xff]  ;;  %v1298_v3 = vld [vmem:[%s3842_s1 + $0x10] sm:$0xff]  ;;  %v2844_v12 = vld [vmem:[%s3789_s12] ss:$0 sm:$0xff] }
  0x2a   : > { %v2676_v4 = vld [vmem:[%s3842_s1 + $0x50] sm:$0xff]  ;;  %v1246_v16 = vld [vmem:[%s3843_s2] sm:$0xf]  ;;  %v2671_v17 = vld [vmem:[%s3843_s2 + $0x4] sm:$0xf] }
  0x2b   : > { %1124 = vmatpush.msrb.mxu3 %v2653_v39  ;;  %v1297_v18 = vld [vmem:[%s3842_s1 + $0x8] sm:$0xff]  ;;  %v2710_v38 = vld [vmem:[%s3790_s13 + $0x10] sm:$0xf]  ;;  %v1386_v39 = vld [vmem:[%s3791_s14] sm:$0xff] }
  0x2c   : > { %v2675_v19 = vld [vmem:[%s3842_s1 + $0x48] sm:$0xff] }
  0x2d   : > { %1125 = vmatpush.msrb.mxu3 %v2652_v40  ;;  %v2700_v40 = vld [vmem:[%s3791_s14 + $0x58] sm:$0xff] }
  0x2f   : > { %1126 = vmatpush.msrb.mxu3 %v2651_v41  ;;  %v2699_v41 = vld [vmem:[%s3791_s14 + $0x50] sm:$0xff] }
  0x9c   : > { %v881_v20 = vpop.f32.mrf.mxu0 }
  0x9d   : > { %v906_v21 = vpop.f32.mrf.mxu1 }
  0x9e   : > { %v909_v22 = vmax.f32 %v881_v20, %v906_v21  ;;  %v1296_v20 = vld [vmem:[%s3842_s1] sm:$0xff] }
  0x9f   : > { %v2674_v21 = vld [vmem:[%s3842_s1 + $0x40] sm:$0xff]  ;;  %s2785_s1 = sshll.u32 %s3863_s4, 6 }
  0xa0   : > { %2630 = vmatmul.msk.f32.vlgmr.msra.gmra.mxu2 %vm3823_vm1, %v909_v22  ;;  %2639 = vmatmul.msk.f32.vlgmr.msra.gmra.mxu3 %vm3823_vm1, %v909_v22  ;;  %s3513_s2 = scalar_lea.vmem %s3852_s6, %s2785_s1  ;;  %s838_s1 = scalar_lea.vmem %s3804_s27, %s2786_s7 }
  0xa1   : > { %1231 = vmatpush.msra.mxu3 %v2668_v42  ;;  %v2698_v42 = vld [vmem:[%s3791_s14 + $0x48] sm:$0xff] }
  0xa3   : > { %1232 = vmatpush.msra.mxu3 %v2667_v47  ;;  %v2702_v47 = vld [vmem:[%s3790_s13 + $0xc] sm:$0xf] }
  0xa5   : > { %1233 = vmatpush.msra.mxu3 %v2666_v49  ;;  %v2715_v49 = vld [vmem:[%s3791_s14 + $0x90] sm:$0xff] }
  0xa7   : > { %1234 = vmatpush.msra.mxu3 %v2665_v51  ;;  %v2714_v51 = vld [vmem:[%s3791_s14 + $0x88] sm:$0xff] }
 0x123   : > { %v939_v23 = vpop.f32.mrf.mxu2  ;;  %v968_v24 = vpop.f32.mrf.mxu3 }
 0x124   : > { %v971_v25 = vmax.f32 %v939_v23, %v968_v24 }
 0x126   : > { %992 = vmatpush.msrb.mxu0 %v971_v25  ;;  %1021 = vmatpush.msrb.mxu1 %v971_v25 }
 0x127   : > { %1098 = vmatpush.msrb.mxu2 %v971_v25  ;;  %2640 = vmatmul.msk.f32.vlgmr.msrb.gmra.mxu0 %vm973_vm2, %v972_v26 }
 0x128   : > { %2642 = vmatmul.msk.f32.vlgmr.msrb.gmra.mxu1 %vm973_vm2, %v2641_v27  ;;  %1047 = vmatpush.msra.mxu0 %v2646_v28  ;;  %v1357_v28 = vld [vmem:[%s3790_s13] sm:$0xf] }
 0x129   : > { %2650 = vmatmul.msk.f32.vlgmr.msrb.gmra.mxu2 %vm973_vm2, %v2649_v29  ;;  %1070 = vmatpush.msra.mxu1 %v1000_v30  ;;  %v2685_v29 = vld [vmem:[%s3790_s13 + $0x4] sm:$0xf]  ;;  %v2691_v30 = vld [vmem:[%s3791_s14 + $0x38] sm:$0xff] }
 0x12a   : > { %1206 = vmatpush.msra.mxu2 %v971_v25  ;;  %1048 = vmatpush.msra.mxu0 %v2645_v31  ;;  %v2694_v31 = vld [vmem:[%s3790_s13 + $0x8] sm:$0xf] }
 0x12b   : > { %1071 = vmatpush.msra.mxu1 %v999_v32  ;;  %v1389_v32 = vld [vmem:[%s3791_s14 + $0x18] sm:$0xff] }
 0x12c   : > { %1049 = vmatpush.msra.mxu0 %v2644_v33  ;;  %1315 = vmatpush.msrb.mxu2 %v1303_v57  ;;  %v2690_v33 = vld [vmem:[%s3791_s14 + $0x30] sm:$0xff] }
 0x12d   : > { %1072 = vmatpush.msra.mxu1 %v998_v34  ;;  %v1388_v34 = vld [vmem:[%s3791_s14 + $0x10] sm:$0xff] }
 0x12e   : > { %1050 = vmatpush.msra.mxu0 %v2643_v35  ;;  %1316 = vmatpush.msrb.mxu2 %v1302_v59  ;;  %v2689_v35 = vld [vmem:[%s3791_s14 + $0x28] sm:$0xff]  ;;  %v1690_v59 = vld [vmem:[%s3844_s3 + $0x18] sm:$0xff] }
 0x12f   : > { %1073 = vmatpush.msra.mxu1 %v997_v37  ;;  %v2688_v37 = vld [vmem:[%s3791_s14 + $0x20] sm:$0xff] }
 0x130   : > { %1152 = vmatpush.msrb.mxu0 %v971_v25  ;;  %1317 = vmatpush.msrb.mxu2 %v1301_v61  ;;  %v1689_v61 = vld [vmem:[%s3844_s3 + $0x10] sm:$0xff] }
 0x131   : > { %2664 = vmatmul.msk.f32.vlgmr.msra.gmra.mxu2 %vm973_vm2, %v2663_v36  ;;  %1177 = vmatpush.msrb.mxu1 %v2661_v48  ;;  %v1387_v36 = vld [vmem:[%s3791_s14 + $0x8] sm:$0xff] }
 0x132   : > { %1318 = vmatpush.msrb.mxu2 %v1300_v63 }
 0x133   : > { %1178 = vmatpush.msrb.mxu1 %v2660_v50  ;;  %v2708_v50 = vld [vmem:[%s3791_s14 + $0x78] sm:$0xff] }
 0x134   : > { %1319 = vmatpush.msrb.mxu2 %v1299_v1 }
 0x135   : > { %1179 = vmatpush.msrb.mxu1 %v2659_v52  ;;  %v2707_v52 = vld [vmem:[%s3791_s14 + $0x70] sm:$0xff] }
 0x136   : > { %1320 = vmatpush.msrb.mxu2 %v1298_v3 }
 0x137   : > { %1180 = vmatpush.msrb.mxu1 %v2658_v54  ;;  %v2706_v54 = vld [vmem:[%s3791_s14 + $0x68] sm:$0xff] }
 0x138   : > { %1321 = vmatpush.msrb.mxu2 %v1297_v18 }
 0x13a   : > { %1322 = vmatpush.msrb.mxu2 %v1296_v20  ;;  %v1770_v20 = vld [vmem:[%s3794_s17 + $0x8] sm:$0xff] }
 0x1a4   : > { %v994_v43 = vpop.f32.mrf.mxu0 }
 0x1a5   : > { %v1023_v44 = vpop.f32.mrf.mxu1  ;;  %2648 = vmatmul.msk.f32.vlgmr.msra.gmra.mxu1 %vm1031_vm3, %v994_v43  ;;  %v2697_v43 = vld [vmem:[%s3791_s14 + $0x40] sm:$0xff] }
 0x1a6   : > { %2647 = vmatmul.msk.f32.vlgmr.msra.gmra.mxu0 %vm1031_vm3, %v1023_v44  ;;  %v2716_v44 = vld [vmem:[%s3791_s14 + $0x98] sm:$0xff] }
 0x1ac   : > { %v1100_v46 = vpop.f32.mrf.mxu2 }
 0x1ad   : > { %2655 = vmatmul.msk.f32.vlgmr.msrb.gmra.mxu3 %vm1031_vm3, %v1100_v46 }
 0x1ae   : > { %2657 = vmatmul.msk.f32.vlgmr.msrb.gmra.mxu0 %vm973_vm2, %v2656_v45  ;;  %1344 = vmatpush.msrb.mxu3 %v2681_v58 }
 0x1b0   : > { %1345 = vmatpush.msrb.mxu3 %v2680_v60  ;;  %v2727_v60 = vld [vmem:[%s3844_s3 + $0x38] sm:$0xff] }
 0x1b2   : > { %1346 = vmatpush.msrb.mxu3 %v2679_v62  ;;  %v2726_v62 = vld [vmem:[%s3844_s3 + $0x30] sm:$0xff] }
 0x1b4   : > { %v1208_v53 = vpop.f32.mrf.mxu2  ;;  %1347 = vmatpush.msrb.mxu3 %v2678_v0 }
 0x1b5   : > { %2669 = vmatmul.msk.f32.vlgmr.msra.gmra.mxu3 %vm1031_vm3, %v1208_v53  ;;  %v2713_v53 = vld [vmem:[%s3791_s14 + $0x80] sm:$0xff] }
 0x1b6   : > { %1348 = vmatpush.msrb.mxu3 %v2677_v2 }
 0x1b8   : > { %1349 = vmatpush.msrb.mxu3 %v2676_v4 }
 0x1ba   : > { %1350 = vmatpush.msrb.mxu3 %v2675_v19  ;;  %v2735_v19 = vld [vmem:[%s3794_s17 + $0x18] sm:$0xff] }
 0x1bc   : > { %1351 = vmatpush.msrb.mxu3 %v2674_v21 }
 0x1be   : > { %1511 = vmatpush.msra.mxu3 %v2700_v40 }
 0x1c0   : > { %1512 = vmatpush.msra.mxu3 %v2699_v41  ;;  %v2846_v41 = vld [vmem:[%s3795_s18] ss:$0 sm:$0xff] }
 0x1c2   : > { %1513 = vmatpush.msra.mxu3 %v2698_v42 }
 0x1c4   : > { %1514 = vmatpush.msra.mxu3 %v2697_v43 }
 0x222   : > { %v1075_v5 = vpop.f32.mrf.mxu1 }
 0x223   : > { %v1052_v55 = vpop.f32.mrf.mxu0 }
 0x224   : > { %v1076_v7 = vadd.f32 %v1075_v5, %v1052_v55 }
 0x22b   : > { %v1154_v56 = vpop.f32.mrf.mxu0 }
 0x22c   : > { %2662 = vmatmul.msk.f32.vlgmr.msrb.gmra.mxu1 %vm1031_vm3, %v1154_v56  ;;  %v2705_v56 = vld [vmem:[%s3791_s14 + $0x60] sm:$0xff] }
 0x230   : > { %v1128_v6 = vpop.f32.mrf.mxu3 }
 0x231   : > { %v1131_v8 = vadd.f32 %v1128_v6, %v1076_v7  ;;  %v2845_v6 = vld [vmem:[%s3792_s15] ss:$0 sm:$0xff] }
 0x238   : > { %v1236_v10 = vpop.f32.mrf.mxu3 }
 0x2a9   : > { %v1182_v9 = vpop.f32.mrf.mxu1 }
 0x2aa   : > { %v1185_v11 = vadd.f32 %v1182_v9, %v1131_v8 }
 0x2ac   : > { %v1239_v13 = vadd.f32 %v1236_v10, %v1185_v11  ;;  %v1634_v10 = vld [vmem:[%s3845_s5] sm:$0x3]  ;;  %v2720_v11 = vld [vmem:[%s3845_s5 + $0x2] sm:$0x3] }
 0x2ae   : > { %v1244_v14 = vadd.f32 %v2844_v12, %v1239_v13  ;;  %v1688_v12 = vld [vmem:[%s3844_s3 + $0x8] sm:$0xff] }
 0x2af   : > { %v2725_v13 = vld [vmem:[%s3844_s3 + $0x28] sm:$0xff] }
 0x2b0   : > { %v1245_v15 = vmax.f32 %v1244_v14, 0.0  ;;  %v1687_v14 = vld [vmem:[%s3844_s3] sm:$0xff] }
 0x2b2   : > { %1265 = vmatpush.msra.mxu0 %v1245_v15  ;;  %1290 = vmatpush.msra.mxu1 %v1245_v15  ;;  %v2724_v15 = vld [vmem:[%s3844_s3 + $0x20] sm:$0xff] }
 0x2b3   : > { %2670 = vmatmul.msk.f32.vlgmr.msra.gmra.mxu0 %vm973_vm2, %v1246_v16  ;;  %2672 = vmatmul.msk.f32.vlgmr.msra.gmra.mxu1 %vm973_vm2, %v2671_v17 }
 0x330   : > { %v1267_v22 = vpop.f32.mrf.mxu0  ;;  %v1292_v23 = vpop.f32.mrf.mxu1 }
 0x331   : > { %v1295_v24 = vmax.f32 %v1267_v22, %v1292_v23 }
 0x333   : > { %2673 = vmatmul.msk.f32.vlgmr.msrb.gmra.mxu2 %vm3823_vm1, %v1295_v24  ;;  %2682 = vmatmul.msk.f32.vlgmr.msrb.gmra.mxu3 %vm3823_vm1, %v1295_v24  ;;  %v1740_v24 = vld [vmem:[%s3793_s16] sm:$0xf] }
 0x334   : > { %1619 = vmatpush.msrb.mxu3 %v2716_v44 }
 0x336   : > { %1620 = vmatpush.msrb.mxu3 %v2715_v49  ;;  %v2751_v49 = vld [vmem:[%s3846_s10 + $0x28] sm:$0xff] }
 0x338   : > { %1621 = vmatpush.msrb.mxu3 %v2714_v51  ;;  %v2750_v51 = vld [vmem:[%s3846_s10 + $0x20] sm:$0xff] }
 0x33a   : > { %1622 = vmatpush.msrb.mxu3 %v2713_v53 }
 0x3b6   : > { %v1324_v25 = vpop.f32.mrf.mxu2  ;;  %v1353_v26 = vpop.f32.mrf.mxu3 }
 0x3b7   : > { %v1356_v27 = vmax.f32 %v1324_v25, %v1353_v26  ;;  %v2731_v25 = vld [vmem:[%s3793_s16 + $0x4] sm:$0xf]  ;;  %v2738_v26 = vld [vmem:[%s3793_s16 + $0x8] sm:$0xf] }
 0x3b9   : > { %2683 = vmatpush.msk.msrb.mxu0 %vm3822_vm4, %v1356_v27  ;;  %2686 = vmatpush.msk.msrb.mxu1 %vm3822_vm4, %v1356_v27 }
 0x3ba   : > { %2695 = vmatpush.msk.msra.mxu2 %vm3822_vm4, %v1356_v27  ;;  %2684 = vmatmul.msk.f32.vlgmr.msrb.gmra.mxu0 %vm1358_vm5, %v1357_v28  ;;  %v1769_v28 = vld [vmem:[%s3794_s17] sm:$0xff] }
 0x3bb   : > { %2687 = vmatmul.msk.f32.vlgmr.msrb.gmra.mxu1 %vm1358_vm5, %v2685_v29  ;;  %1435 = vmatpush.msra.mxu0 %v2691_v30  ;;  %v2742_v29 = vld [vmem:[%s3794_s17 + $0x28] sm:$0xff]  ;;  %v2741_v30 = vld [vmem:[%s3794_s17 + $0x20] sm:$0xff] }
 0x3bc   : > { %2696 = vmatmul.msk.f32.vlgmr.msra.gmra.mxu2 %vm1358_vm5, %v2694_v31  ;;  %1458 = vmatpush.msra.mxu1 %v1389_v32 }
 0x3bd   : > { %2711 = vmatpush.msk.msrb.mxu2 %vm3822_vm4, %v1356_v27  ;;  %1436 = vmatpush.msra.mxu0 %v2690_v33 }
 0x3be   : > { %1459 = vmatpush.msra.mxu1 %v1388_v34  ;;  %v1959_v34 = vld [vmem:[%s3846_s10 + $0x18] sm:$0xff] }
 0x3bf   : > { %1437 = vmatpush.msra.mxu0 %v2689_v35  ;;  %1706 = vmatpush.msra.mxu2 %v1690_v59  ;;  %v2753_v35 = vld [vmem:[%s3846_s10 + $0x38] sm:$0xff] }
 0x3c0   : > { %1460 = vmatpush.msra.mxu1 %v1387_v36  ;;  %v1958_v36 = vld [vmem:[%s3846_s10 + $0x10] sm:$0xff] }
 0x3c1   : > { %1438 = vmatpush.msra.mxu0 %v2688_v37  ;;  %1707 = vmatpush.msra.mxu2 %v1689_v61  ;;  %v2752_v37 = vld [vmem:[%s3846_s10 + $0x30] sm:$0xff] }
 0x3c2   : > { %1461 = vmatpush.msra.mxu1 %v1386_v39 }
 0x3c3   : > { %2703 = vmatpush.msk.msrb.mxu0 %vm3822_vm4, %v1356_v27  ;;  %1708 = vmatpush.msra.mxu2 %v1688_v12  ;;  %v2734_v27 = vld [vmem:[%s3794_s17 + $0x10] sm:$0xff]  ;;  %v2857_v12 = vmov 3  }
 0x3c4   : > { %2712 = vmatmul.msk.f32.vlgmr.msrb.gmra.mxu2 %vm1358_vm5, %v2710_v38  ;;  %1565 = vmatpush.msrb.mxu1 %v2708_v50  ;;  %v1956_v50 = vld [vmem:[%s3846_s10] sm:$0xff] }
 0x3c5   : > { %1709 = vmatpush.msra.mxu2 %v1687_v14 }
 0x3c6   : > { %1566 = vmatpush.msrb.mxu1 %v2707_v52 }
 0x3c7   : > { %1816 = vmatpush.msrb.mxu2 %v2735_v19  ;;  %v849_v19 = vld [vmem:[%s3802_s25 + $0x38] sm:$0xff] }
 0x3c8   : > { %1567 = vmatpush.msrb.mxu1 %v2706_v54 }
 0x3c9   : > { %1817 = vmatpush.msrb.mxu2 %v2734_v27  ;;  %v843_v27 = vld [vmem:[%s3802_s25 + $0x8] sm:$0xff] }
 0x3ca   : > { %1568 = vmatpush.msrb.mxu1 %v2705_v56  ;;  %v2009_v56 = vld [vmem:[%s3796_s19] sm:$0xff] }
 0x437   : > { %v1383_v45 = vpop.f32.mrf.mxu0 }
 0x438   : > { %v1412_v46 = vpop.f32.mrf.mxu1  ;;  %2693 = vmatmul.msk.f32.vlgmr.msra.gmra.mxu1 %vm1031_vm3, %v1383_v45 }
 0x439   : > { %2692 = vmatmul.msk.f32.vlgmr.msra.gmra.mxu0 %vm1031_vm3, %v1412_v46  ;;  %v1903_v46 = vld [vmem:[%s3847_s11] sm:$0x3] }
 0x43f   : > { %v1488_v48 = vpop.f32.mrf.mxu2 }
 0x440   : > { %2701 = vmatmul.msk.f32.vlgmr.msra.gmra.mxu3 %vm1031_vm3, %v1488_v48  ;;  %v1957_v48 = vld [vmem:[%s3846_s10 + $0x8] sm:$0xff] }
 0x441   : > { %2704 = vmatmul.msk.f32.vlgmr.msrb.gmra.mxu0 %vm1358_vm5, %v2702_v47  ;;  %1731 = vmatpush.msra.mxu3 %v2727_v60  ;;  %v2746_v47 = vld [vmem:[%s3847_s11 + $0x2] sm:$0x3] }
 0x443   : > { %1732 = vmatpush.msra.mxu3 %v2726_v62 }
 0x445   : > { %1733 = vmatpush.msra.mxu3 %v2725_v13  ;;  %v856_v13 = vld [vmem:[%s3799_s22] sm:$0x1] }
 0x447   : > { %v1596_v55 = vpop.f32.mrf.mxu2  ;;  %1734 = vmatpush.msra.mxu3 %v2724_v15 }
 0x448   : > { %2717 = vmatmul.msk.f32.vlgmr.msrb.gmra.mxu3 %vm1031_vm3, %v1596_v55  ;;  %v2010_v55 = vld [vmem:[%s3796_s19 + $0x8] sm:$0xff] }
 0x449   : > { %1839 = vmatpush.msrb.mxu3 %v1770_v20  ;;  %v847_v20 = vld [vmem:[%s3802_s25 + $0x28] sm:$0xff] }
 0x44b   : > { %1840 = vmatpush.msrb.mxu3 %v1769_v28 }
 0x4b5   : > { %v1463_v63 = vpop.f32.mrf.mxu1 }
 0x4b6   : > { %v1440_v57 = vpop.f32.mrf.mxu0 }
 0x4b7   : > { %v1464_v1 = vadd.f32 %v1463_v63, %v1440_v57  ;;  %v2757_v57 = vld [vmem:[%s3796_s19 + $0x18] sm:$0xff] }
 0x4b8   : > { %v855_v63 = vld [vmem:[%s3798_s21 + $0x18] sm:$0xff] }
 0x4be   : > { %v1542_v58 = vpop.f32.mrf.mxu0 }
 0x4bf   : > { %2709 = vmatmul.msk.f32.vlgmr.msrb.gmra.mxu1 %vm1031_vm3, %v1542_v58  ;;  %v2756_v58 = vld [vmem:[%s3796_s19 + $0x10] sm:$0xff] }
 0x4c3   : > { %v1516_v0 = vpop.f32.mrf.mxu3 }
 0x4c4   : > { %v1519_v2 = vadd.f32 %v1516_v0, %v1464_v1  ;;  %v854_v0 = vld [vmem:[%s3798_s21 + $0x10] sm:$0xff]  ;;  %v853_v1 = vld [vmem:[%s3798_s21 + $0x8] sm:$0xff] }
 0x4cb   : > { %v1624_v4 = vpop.f32.mrf.mxu3 }
 0x53c   : > { %v1570_v3 = vpop.f32.mrf.mxu1 }
 0x53d   : > { %v1573_v5 = vadd.f32 %v1570_v3, %v1519_v2  ;;  %v852_v2 = vld [vmem:[%s3798_s21] sm:$0xff] }
 0x53e   : > { %v840_v3 = vld [vmem:[%s3801_s24] sm:$0xff] }
 0x53f   : > { %v1627_v7 = vadd.f32 %v1624_v4, %v1573_v5  ;;  %v2855_v4 = vmov 0   ;;  %v851_v5 = vld [vmem:[%s3797_s20] sm:$0x1] }
 0x540   : > { %2837 = vset.pattern.permute.xlu2 %v2855_v4  ;;  %2833 = vset.pattern.permute.xlu0 %v2855_v4 }
 0x541   : > { %v1632_v8 = vadd.f32 %v2845_v6, %v1627_v7  ;;  %2225 = vperm.xlu2 %2837, %v840_v3  }
 0x543   : > { %v1633_v9 = vmax.f32 %v1632_v8, 0.0 }
 0x545   : > { %2718 = vmatpush.msk.msra.mxu0 %vm3822_vm4, %v1633_v9  ;;  %2721 = vmatpush.msk.msra.mxu1 %vm3822_vm4, %v1633_v9 }
 0x546   : > { %2719 = vmatmul.msk.f32.vlgmr.msra.gmra.mxu0 %vm1358_vm5, %v1634_v10  ;;  %2722 = vmatmul.msk.f32.vlgmr.msra.gmra.mxu1 %vm1358_vm5, %v2720_v11  ;;  %v2856_v11 = vmov 2  }
 0x547   : > { %2835 = vset.pattern.permute.xlu1 %v2856_v11 }
 0x549   : > { %2838 = vset.pattern.permute.xlu2 %v2857_v12 }
 0x5c3   : > { %v1658_v16 = vpop.f32.mrf.mxu0  ;;  %v1683_v17 = vpop.f32.mrf.mxu1 }
 0x5c4   : > { %v1686_v18 = vmax.f32 %v1658_v16, %v1683_v17  ;;  %v841_v16 = vld [vmem:[%s3801_s24 + $0x8] sm:$0xff]  ;;  %v2858_v17 = vmov 5  }
 0x5c6   : > { %2723 = vmatmul.msk.f32.vlgmr.msra.gmra.mxu2 %vm1031_vm3, %v1686_v18  ;;  %2728 = vmatmul.msk.f32.vlgmr.msra.gmra.mxu3 %vm1031_vm3, %v1686_v18  ;;  %v2859_v18 = vmov 1  }
 0x649   : > { %v1711_v21 = vpop.f32.mrf.mxu2  ;;  %v1736_v22 = vpop.f32.mrf.mxu3 }
 0x64a   : > { %v1739_v23 = vmax.f32 %v1711_v21, %v1736_v22  ;;  %v2860_v21 = vmov 4   ;;  %v844_v22 = vld [vmem:[%s3802_s25 + $0x10] sm:$0xff] }
 0x64c   : > { %2729 = vmatpush.msk.msrb.mxu0 %vm1745_vm6, %v1739_v23  ;;  %2732 = vmatpush.msk.msrb.mxu1 %vm1745_vm6, %v1739_v23 }
 0x64d   : > { %2730 = vmatmul.msk.f32.vlgmr.msrb.gmra.mxu0 %vm1741_vm7, %v1740_v24  ;;  %2733 = vmatmul.msk.f32.vlgmr.msrb.gmra.mxu1 %vm1741_vm7, %v2731_v25  ;;  %v845_v24 = vld [vmem:[%s3802_s25 + $0x18] sm:$0xff]  ;;  %v846_v25 = vld [vmem:[%s3802_s25 + $0x20] sm:$0xff] }
 0x64e   : > { %2739 = vmatpush.msk.msra.mxu0 %vm1745_vm6, %v1739_v23  ;;  %1890 = vmatpush.msra.mxu1 %v2742_v29  ;;  %v848_v23 = vld [vmem:[%s3802_s25 + $0x30] sm:$0xff] }
 0x650   : > { %1891 = vmatpush.msra.mxu1 %v2741_v30  ;;  %1975 = vmatpush.msrb.mxu0 %v1959_v34  ;;  %v839_v30 = vld [vmem:[%s3800_s23] sm:$0xf] }
 0x651   : > { %v2092_v34 = vperm.slane %v839_v30, 0 }
 0x652   : > { %2000 = vmatpush.msrb.mxu1 %v2753_v35  ;;  %1976 = vmatpush.msrb.mxu0 %v1958_v36  ;;  %v2093_v35 = vperm.slane %v839_v30, 2 }
 0x654   : > { %2001 = vmatpush.msrb.mxu1 %v2752_v37  ;;  %1977 = vmatpush.msrb.mxu0 %v1957_v48 }
 0x655   : > { %2740 = vmatmul.msk.f32.vlgmr.msra.gmra.mxu0 %vm1741_vm7, %v2738_v26  ;;  %v842_v26 = vld [vmem:[%s3802_s25] sm:$0xff] }
 0x656   : > { %2002 = vmatpush.msrb.mxu1 %v2751_v49  ;;  %1978 = vmatpush.msrb.mxu0 %v1956_v50 }
 0x658   : > { %2003 = vmatpush.msrb.mxu1 %v2750_v51  ;;  %2078 = vmatpush.msra.mxu0 %v855_v63 }
 0x65a   : > { %2079 = vmatpush.msra.mxu0 %v854_v0 }
 0x65c   : > { %2080 = vmatpush.msra.mxu0 %v853_v1 }
 0x65e   : > { %2081 = vmatpush.msra.mxu0 %v852_v2 }
 0x6ca   : > { %v1766_v31 = vpop.f32.mrf.mxu0  ;;  %v1793_v32 = vpop.f32.mrf.mxu1 }
 0x6cb   : > { %2736 = vmatmul.msk.f32.vlgmr.msrb.gmra.mxu2 %vm860_vm0, %v1793_v32  ;;  %2737 = vmatmul.msk.f32.vlgmr.msrb.gmra.mxu3 %vm860_vm0, %v1766_v31  ;;  %v3483_v31 = vpop.permute.xlu2 %2225  ;;  %v2102_v32 = vperm.slane %v839_v30, 1 }
 0x6d2   : > { %v1867_v33 = vpop.f32.mrf.mxu0 }
 0x6d3   : > { %2743 = vmatmul.msk.f32.vlgmr.msra.gmra.mxu1 %vm860_vm0, %v1867_v33  ;;  %v2103_v33 = vperm.slane %v839_v30, 3 }
 0x74e   : > { %v1819_v38 = vpop.f32.mrf.mxu2  ;;  %v1842_v39 = vpop.f32.mrf.mxu3 }
 0x74f   : > { %v1843_v40 = vadd.f32 %v1842_v39, %v1819_v38 }
 0x750   : > { %v1893_v42 = vpop.f32.mrf.mxu1 }
 0x751   : > { %v1896_v43 = vadd.f32 %v1893_v42, %v1843_v40 }
 0x753   : > { %v1901_v44 = vadd.f32 %v2846_v41, %v1896_v43 }
 0x755   : > { %v1902_v45 = vmax.f32 %v1901_v44, 0.0 }
 0x757   : > { %2744 = vmatpush.msk.msra.mxu2 %vm3822_vm4, %v1902_v45  ;;  %2747 = vmatpush.msk.msra.mxu3 %vm3822_vm4, %v1902_v45 }
 0x758   : > { %2745 = vmatmul.msk.f32.vlgmr.msra.gmra.mxu2 %vm1358_vm5, %v1903_v46  ;;  %2748 = vmatmul.msk.f32.vlgmr.msra.gmra.mxu3 %vm1358_vm5, %v2746_v47 }
 0x759   : > { %2028 = vmatpush.msrb.mxu2 %v2010_v55  ;;  %2055 = vmatpush.msrb.mxu3 %v2757_v57 }
 0x75b   : > { %2029 = vmatpush.msrb.mxu2 %v2009_v56  ;;  %2056 = vmatpush.msrb.mxu3 %v2756_v58 }
 0x7db   : > { %v1927_v52 = vpop.f32.mrf.mxu2  ;;  %v1952_v53 = vpop.f32.mrf.mxu3 }
 0x7dc   : > { %v1955_v54 = vmax.f32 %v1927_v52, %v1952_v53 }
 0x7de   : > { %2749 = vmatmul.msk.f32.vlgmr.msrb.gmra.mxu0 %vm1031_vm3, %v1955_v54  ;;  %2754 = vmatmul.msk.f32.vlgmr.msrb.gmra.mxu1 %vm1031_vm3, %v1955_v54 }
 0x85b   : > { %v1980_v59 = vpop.f32.mrf.mxu0  ;;  %v2005_v60 = vpop.f32.mrf.mxu1 }
 0x85c   : > { %v2008_v61 = vmax.f32 %v1980_v59, %v2005_v60 }
 0x85e   : > { %v2038_v62 = vrot.slane %v2008_v61, 1  ;;  %2755 = vmatmul.msk.f32.vlgmr.msrb.gmra.mxu2 %vm860_vm0, %v2008_v61 }
 0x860   : > { %2758 = vmatmul.msk.f32.vlgmr.msrb.gmra.mxu3 %vm860_vm0, %v2038_v62 }
 0x8e1   : > { %v2031_v6 = vpop.f32.mrf.mxu2 }
 0x8e2   : > { %v2034_v7 = vadd.f32 %v2031_v6, %v851_v5 }
 0x8e3   : > { %v2058_v8 = vpop.f32.mrf.mxu3 }
 0x8e4   : > { %v2061_v9 = vadd.f32 %v2058_v8, %v2034_v7 }
 0x8e6   : > { %v2062_v10 = vmax.f32 %v2061_v9, 0.0 }
 0x8e8   : > { %2759 = vmatmul.msk.f32.vlgmr.msra.gmra.mxu0 %vm1031_vm3, %v2062_v10 }
 0x965   : > { %v2083_v14 = vpop.f32.mrf.mxu0 }
 0x966   : > { %v2084_v15 = vadd.f32 %v2083_v14, %v856_v13 }
 0x968   : > { %2117 = vperm.xlu2 %2838, %v2084_v15   ;;  %2111 = vperm.xlu1 %2835, %v2084_v15  }
 0x969   : > { %2088 = vperm.xlu0 %2833, %v2084_v15  }
 0x970   : > { %2840 = vset.pattern.permute.xlu2 %v2858_v17  ;;  %2836 = vset.pattern.permute.xlu1 %v2855_v4 }
 0x971   : > { %2834 = vset.pattern.permute.xlu0 %v2859_v18  ;;  %2131 = vperm.xlu2 %2840, %v2084_v15  }
 0x972   : > { %2228 = vperm.xlu1 %2836, %v841_v16   ;;  %2099 = vperm.xlu0 %2834, %v2084_v15  }
 0x979   : > { %2843 = vset.pattern.permute.xlu2 %v2855_v4 }
 0x97a   : > { %2839 = vset.pattern.permute.xlu1 %v2860_v21  ;;  %2841 = vset.pattern.permute.xlu0 %v2855_v4 }
 0x97b   : > { %2123 = vperm.xlu1 %2839, %v2084_v15   ;;  %2280 = vperm.xlu0 %2841, %v849_v19  }
 0x97c   : > { %2274 = vperm.xlu2 %2843, %v847_v20  }
 0x983   : > { %2842 = vset.pattern.permute.xlu1 %v2855_v4  ;;  %2265 = vperm.xlu0 %2841, %v844_v22  }
 0x984   : > { %2277 = vperm.xlu1 %2842, %v848_v23   ;;  %2268 = vperm.xlu2 %2843, %v845_v24  }
 0x98c   : > { %2271 = vperm.xlu1 %2842, %v846_v25   ;;  %2259 = vperm.xlu2 %2843, %v842_v26  }
 0x994   : > { %2262 = vperm.xlu1 %2842, %v843_v27  }
 0x9c2   : > { %v2118_v46 = vpop.permute.xlu2 %2117 }
 0x9c3   : > { %v2120_v52 = vmul.f32 %v2118_v46, %v2092_v34  ;;  %v2121_v53 = vmul.f32 %v2118_v46, %v2093_v35 }
 0x9da   : > { %v2112_v29 = vpop.permute.xlu1 %2111 }
 0x9db   : > { %v2089_v28 = vpop.permute.xlu0 %2088 }
 0x9dc   : > { %v2096_v38 = vmul.f32 %v2092_v34, %v2089_v28  ;;  %v2097_v39 = vmul.f32 %v2093_v35, %v2089_v28 }
 0x9e4   : > { %v2100_v36 = vpop.permute.xlu0 %2099  ;;  %v3485_v37 = vpop.permute.xlu1 %2228 }
 0x9e5   : > { %v2106_v40 = vmul.f32 %v2102_v32, %v2100_v36  ;;  %v2107_v41 = vmul.f32 %v2103_v33, %v2100_v36 }
 0x9e7   : > { %v2108_v42 = vadd.f32 %v2106_v40, %v2096_v38  ;;  %v2109_v43 = vadd.f32 %v2107_v41, %v2097_v39 }
 0x9e9   : > { %v2114_v44 = vadd.f32 %v2112_v29, %v2108_v42  ;;  %v2115_v45 = vadd.f32 %v2112_v29, %v2109_v43 }
 0x9eb   : > { %v2136_v47 = vadd.f32 1.0, %v2114_v44  ;;  %v2137_v48 = vadd.f32 1.0, %v2115_v45 }
 0x9ed   : > { %v2138_v49 = vmul.f32 16.0, %v2136_v47  ;;  %v2139_v50 = vmul.f32 16.0, %v2137_v48  ;;  %v2124_v51 = vpop.permute.xlu1 %2123  ;;  %v2370_v48 = vld [vmem:[%s3513_s2] sm:$0xff] }
 0x9ee   : > { %v2126_v54 = vmul.f32 %v2124_v51, %v2102_v32  ;;  %v2127_v55 = vmul.f32 %v2124_v51, %v2103_v33 }
 0x9ef   : > { %v2760_v56 = vadd.f32 -1.0, %v2138_v49  ;;  %v2761_v57 = vadd.f32 -1.0, %v2139_v50  ;;  %v2373_v50 = vld [vmem:[%s3513_s2 + $0x18] sm:$0xff] }
 0x9f0   : > { %v3487_v58 = vadd.f32 %v2126_v54, %v2120_v52  ;;  %v3489_v59 = vadd.f32 %v2127_v55, %v2121_v53  ;;  %v2375_v53 = vld [vmem:[%s3513_s2 + $0x28] sm:$0xff]  ;;  %v2374_v54 = vld [vmem:[%s3513_s2 + $0x20] sm:$0xff]  ;;  %v2376_v55 = vld [vmem:[%s3513_s2 + $0x30] sm:$0xff] }
 0x9f1   : > { %v2142_v60 = vmul.f32 0.5, %v2760_v56  ;;  %v2143_v61 = vmul.f32 0.5, %v2761_v57  ;;  %v2372_v56 = vld [vmem:[%s3513_s2 + $0x10] sm:$0xff]  ;;  %v2377_v57 = vld [vmem:[%s3513_s2 + $0x38] sm:$0xff] }
 0x9f3   : > { %v2152_v62 = vfloor.f32 %v2142_v60  ;;  %v2153_v63 = vfloor.f32 %v2143_v61 }
 0x9f5   : > { %v2156_v0 = vadd.f32 1.0, %v2152_v62  ;;  %v2157_v1 = vadd.f32 1.0, %v2153_v63  ;;  %v2176_v2 = vmax.f32 %v2152_v62, 0.0  ;;  %v2177_v10 = vmax.f32 %v2153_v63, 0.0 }
 0x9f6   : > { %v2160_v13 = vsub.f32 %v2142_v60, %v2152_v62  ;;  %vm2168_vm13 = vcmp.ge.f32.partialorder %v2152_v62, 0.0  ;;  %vm2170_vm14 = vcmp.le.f32.partialorder %v2152_v62, 15.0  ;;  %v2161_v22 = vsub.f32 %v2143_v61, %v2153_v63  ;;  %v2132_v60 = vpop.permute.xlu2 %2131 }
 0x9f7   : > { %v2190_v3 = vmax.f32 %v2156_v0, 0.0  ;;  %v2191_v4 = vmax.f32 %v2157_v1, 0.0  ;;  %v2178_v7 = vmin.f32 %v2176_v2, 15.0  ;;  %vm2182_vm10 = vcmp.ge.f32.partialorder %v2156_v0, 0.0  ;;  %vm2172_vm3 = vmand %vm2168_vm13, %vm2170_vm14 }
 0x9f8   : > { %vm2184_vm11 = vcmp.le.f32.partialorder %v2156_v0, 15.0  ;;  %v2179_v18 = vmin.f32 %v2177_v10, 15.0  ;;  %v2162_v20 = vsub.f32 1.0, %v2160_v13  ;;  %vm2183_vm15 = vcmp.ge.f32.partialorder %v2157_v1, 0.0 }
 0x9f9   : > { %v2192_v5 = vmin.f32 %v2190_v3, 15.0  ;;  %v2193_v6 = vmin.f32 %v2191_v4, 15.0  ;;  %v2792_v16 = vcvt.f32.s32 %v2178_v7  ;;  %vm3491_vm12 = vmand %vm2182_vm10, %vm2184_vm11  ;;  %vm2185_vm2 = vcmp.le.f32.partialorder %v2157_v1, 15.0 }
 0x9fa   : > { %v2188_v24 = vsel %vm3491_vm12, %v2160_v13, 0.0  ;;  %v2794_v26 = vcvt.f32.s32 %v2179_v18  ;;  %vm2169_vm5 = vcmp.ge.f32.partialorder %v2153_v63, 0.0  ;;  %v2174_v27 = vsel %vm2172_vm3, %v2162_v20, 0.0  ;;  %vm3497_vm6 = vmand %vm2183_vm15, %vm2185_vm2 }
 0x9fb   : > { %vm2795_vm8 = vcmp.lt.s32.totalorder %v2192_v5, 0  ;;  %v2796_v8 = vceil.f32 %v2192_v5  ;;  %v2797_v9 = vfloor.f32 %v2192_v5  ;;  %vm2800_vm9 = vcmp.lt.s32.totalorder %v2193_v6, 0 }
 0x9fc   : > { %v2801_v11 = vceil.f32 %v2193_v6  ;;  %v2802_v12 = vfloor.f32 %v2193_v6  ;;  %v2230_v25 = vperm.slane %v2792_v16, 0  ;;  %v2163_v29 = vsub.f32 1.0, %v2161_v22 }
 0x9fd   : > { %v2798_v14 = vsel %vm2795_vm8, %v2796_v8, %v2797_v9  ;;  %vm2171_vm8 = vcmp.le.f32.partialorder %v2153_v63, 15.0  ;;  %v2248_v32 = vperm.slane %v2188_v24, 0  ;;  %v2189_v33 = vsel %vm3497_vm6, %v2161_v22, 0.0 }
 0x9fe   : > { %v2799_v15 = vcvt.f32.s32 %v2798_v14  ;;  %v2803_v17 = vsel %vm2800_vm9, %v2801_v11, %v2802_v12  ;;  %vm2234_vm9 = vcmp.eq.s32.totalorder %v3485_v37, %v2230_v25  ;;  %v2231_v34 = vperm.slane %v2794_v26, 0  ;;  %vm2173_vm10 = vmand %vm2169_vm5, %vm2171_vm8  ;;  %v3556_v28 = vpop.permute.xlu2 %2274 }
 0x9ff   : > { %v2804_v23 = vcvt.f32.s32 %v2803_v17  ;;  %v2236_v35 = vperm.slane %v2174_v27, 0  ;;  %v2175_v38 = vsel %vm2173_vm10, %v2163_v29, 0.0  ;;  %v2249_v40 = vperm.slane %v2189_v33, 0 }
 0xa00   : > { %v2242_v21 = vperm.slane %v2799_v15, 0  ;;  %vm2235_vm12 = vcmp.eq.s32.totalorder %v3485_v37, %v2231_v34  ;;  %v2237_v42 = vperm.slane %v2175_v38, 0  ;;  %vm2232_vm13 = vcmp.eq.s32.totalorder %v3483_v31, %v2230_v25  ;;  %v3569_v38 = vpop.permute.xlu0 %2280 }
 0xa01   : > { %v2243_v30 = vperm.slane %v2804_v23, 0  ;;  %v2240_v39 = vsel %vm2234_vm9, %v2236_v35, 0.0  ;;  %v2238_v46 = vsel %vm2232_vm13, %v2236_v35, 0.0  ;;  %vm2233_vm15 = vcmp.eq.s32.totalorder %v3483_v31, %v2231_v34  ;;  %v3552_v23 = vpop.permute.xlu1 %2277 }
 0xa02   : > { %vm2246_vm7 = vcmp.eq.s32.totalorder %v3485_v37, %v2242_v21  ;;  %vm2244_vm14 = vcmp.eq.s32.totalorder %v3483_v31, %v2242_v21  ;;  %v2241_v44 = vsel %vm2235_vm12, %v2237_v42, 0.0  ;;  %v2239_v51 = vsel %vm2233_vm15, %v2237_v42, 0.0 }
 0xa03   : > { %v2252_v36 = vsel %vm2246_vm7, %v2248_v32, 0.0  ;;  %vm2247_vm11 = vcmp.eq.s32.totalorder %v3485_v37, %v2243_v30  ;;  %v2250_v37 = vsel %vm2244_vm14, %v2248_v32, 0.0  ;;  %vm2245_vm2 = vcmp.eq.s32.totalorder %v3483_v31, %v2243_v30  ;;  %v2371_v31 = vld [vmem:[%s3513_s2 + $0x8] sm:$0xff] }
 0xa04   : > { %v2256_v41 = vadd.f32 %v2252_v36, %v2240_v39  ;;  %v2253_v43 = vsel %vm2247_vm11, %v2249_v40, 0.0  ;;  %v2254_v47 = vadd.f32 %v2250_v37, %v2238_v46  ;;  %v2251_v49 = vsel %vm2245_vm2, %v2249_v40, 0.0 }
 0xa05   : > { %v2257_v45 = vadd.f32 %v2253_v43, %v2241_v44  ;;  %v2255_v52 = vadd.f32 %v2251_v49, %v2239_v51  ;;  %v2135_v61 = vadd.f32 %v2132_v60, %v3489_v59  ;;  %v2134_v0 = vadd.f32 %v2132_v60, %v3487_v58 }
 0xa06   : > { %2416 = vmatpush.msrb.mxu0 %v2256_v41  ;;  %2787 = vmatpush.msra.mxu1 %v2256_v41 }
 0xa07   : > { %2457 = vmatpush.msra.mxu2 %v2257_v45  ;;  %2789 = vmatpush.msra.mxu3 %v2257_v45  ;;  %v2145_v62 = vadd.f32 1.0, %v2135_v61  ;;  %v2144_v2 = vadd.f32 1.0, %v2134_v0 }
 0xa08   : > { %2417 = vmatpush.msrb.mxu0 %v2254_v47  ;;  %2788 = vmatpush.msra.mxu1 %v2254_v47 }
 0xa09   : > { %2764 = vmatmul.msk.f32.vlgmr.msrb.gmra.mxu0 %vm860_vm0, %v2370_v48  ;;  %2767 = vmatmul.msk.f32.vlgmr.msra.gmra.mxu1 %vm860_vm0, %v2373_v50  ;;  %v2147_v63 = vmul.f32 16.0, %v2145_v62  ;;  %v2146_v4 = vmul.f32 16.0, %v2144_v2  ;;  %v3580_v37 = vpop.permute.xlu1 %2271 }
 0xa0a   : > { %2458 = vmatpush.msra.mxu2 %v2255_v52  ;;  %2790 = vmatpush.msra.mxu3 %v2255_v52  ;;  %v3594_v52 = vpop.permute.xlu2 %2268 }
 0xa0b   : > { %2772 = vmatmul.msk.f32.vlgmr.msra.gmra.mxu2 %vm860_vm0, %v2370_v48  ;;  %2777 = vmatmul.msk.f32.vlgmr.msra.gmra.mxu3 %vm860_vm0, %v2375_v53  ;;  %v2763_v1 = vadd.f32 -1.0, %v2147_v63  ;;  %v2762_v6 = vadd.f32 -1.0, %v2146_v4 }
 0xa0d   : > { %v2151_v3 = vmul.f32 0.5, %v2763_v1  ;;  %v2150_v8 = vmul.f32 0.5, %v2762_v6 }
 0xa0f   : > { %v2155_v5 = vfloor.f32 %v2151_v3  ;;  %v3543_v10 = vfloor.f32 %v2150_v8 }
 0xa11   : > { %2765 = vmatmul.msk.f32.gmra.mxu0 %vm860_vm0, %v2371_v31  ;;  %2768 = vmatmul.msk.f32.gmra.mxu1 %vm860_vm0, %v2374_v54  ;;  %v2159_v7 = vadd.f32 1.0, %v2155_v5  ;;  %v2158_v12 = vadd.f32 1.0, %v3543_v10  ;;  %v2205_v15 = vmax.f32 %v2155_v5, 0.0  ;;  %v2165_v21 = vsub.f32 %v2151_v3, %v2155_v5 }
 0xa12   : > { %v2204_v29 = vmax.f32 %v3543_v10, 0.0  ;;  %vm2197_vm8 = vcmp.ge.f32.partialorder %v2155_v5, 0.0  ;;  %vm2199_vm9 = vcmp.le.f32.partialorder %v2155_v5, 15.0  ;;  %v2164_v42 = vsub.f32 %v2150_v8, %v3543_v10 }
 0xa13   : > { %2773 = vmatmul.msk.f32.gmra.mxu2 %vm860_vm0, %v2371_v31  ;;  %2778 = vmatmul.msk.f32.gmra.mxu3 %vm860_vm0, %v2376_v55  ;;  %v2219_v9 = vmax.f32 %v2159_v7, 0.0  ;;  %v2218_v58 = vmax.f32 %v2158_v12, 0.0  ;;  %v2207_v17 = vmin.f32 %v2205_v15, 15.0  ;;  %vm2211_vm3 = vcmp.ge.f32.partialorder %v2159_v7, 0.0  ;;  %vm2201_vm10 = vmand %vm2197_vm8, %vm2199_vm9 }
 0xa14   : > { %vm2213_vm5 = vcmp.le.f32.partialorder %v2159_v7, 15.0  ;;  %v2167_v32 = vsub.f32 1.0, %v2165_v21  ;;  %v2206_v39 = vmin.f32 %v2204_v29, 15.0  ;;  %vm2210_vm12 = vcmp.ge.f32.partialorder %v2158_v12, 0.0  ;;  %v3624_v7 = vpop.permute.xlu0 %2265 }
 0xa15   : > { %v2221_v11 = vmin.f32 %v2219_v9, 15.0  ;;  %v2220_v18 = vmin.f32 %v2218_v58, 15.0  ;;  %v2808_v25 = vcvt.f32.s32 %v2207_v17  ;;  %vm3559_vm6 = vmand %vm2211_vm3, %vm2213_vm5  ;;  %vm2212_vm13 = vcmp.le.f32.partialorder %v2158_v12, 15.0 }
 0xa16   : > { %v2217_v34 = vsel %vm3559_vm6, %v2165_v21, 0.0  ;;  %v2203_v43 = vsel %vm2201_vm10, %v2167_v32, 0.0  ;;  %v2806_v47 = vcvt.f32.s32 %v2206_v39  ;;  %vm2196_vm2 = vcmp.ge.f32.partialorder %v3543_v10, 0.0 }
 0xa17   : > { %v2815_v59 = vceil.f32 %v2221_v11  ;;  %v2816_v14 = vfloor.f32 %v2221_v11  ;;  %v2810_v26 = vceil.f32 %v2220_v18  ;;  %v2811_v27 = vfloor.f32 %v2220_v18 }
 0xa18   : > { %vm2809_vm7 = vcmp.lt.s32.totalorder %v2220_v18, 0  ;;  %v3567_v36 = vperm.slane %v2808_v25, 0  ;;  %v3578_v46 = vperm.slane %v2217_v34, 0  ;;  %v3586_v48 = vperm.slane %v2203_v43, 0 }
 0xa19   : > { %2766 = vmatmul.msk.f32.gmra.mxu0 %vm860_vm0, %v2372_v56  ;;  %2769 = vmatmul.msk.f32.gmra.mxu1 %vm860_vm0, %v2375_v53  ;;  %v2812_v35 = vsel %vm2809_vm7, %v2810_v26, %v2811_v27  ;;  %vm2198_vm6 = vcmp.le.f32.partialorder %v3543_v10, 15.0  ;;  %v3611_v60 = vperm.slane %v2806_v47, 0 }
 0xa1a   : > { %v2813_v45 = vcvt.f32.s32 %v2812_v35  ;;  %vm2299_vm15 = vcmp.eq.s32.totalorder %v3569_v38, %v3567_v36  ;;  %vm2297_vm5 = vcmp.eq.s32.totalorder %v3552_v23, %v3567_v36  ;;  %vm2295_vm7 = vcmp.eq.s32.totalorder %v3556_v28, %v3567_v36  ;;  %vm2200_vm8 = vmand %vm2196_vm2, %vm2198_vm6 }
 0xa1b   : > { %2774 = vmatmul.msk.f32.gmra.mxu2 %vm860_vm0, %v2372_v56  ;;  %2779 = vmatmul.msk.f32.gmra.mxu3 %vm860_vm0, %v2377_v57  ;;  %v2315_v62 = vsel %vm2297_vm5, %v3586_v48, 0.0  ;;  %v2313_v5 = vsel %vm2295_vm7, %v3586_v48, 0.0  ;;  %vm2290_vm2 = vcmp.eq.s32.totalorder %v3594_v52, %v3611_v60  ;;  %vm2294_vm7 = vcmp.eq.s32.totalorder %v3556_v28, %v3611_v60 }
 0xa1c   : > { %v3603_v31 = vperm.slane %v2813_v45, 0  ;;  %vm2292_vm1 = vcmp.eq.s32.totalorder %v3580_v37, %v3611_v60 }
 0xa1e   : > { %vm2334_vm9 = vcmp.eq.s32.totalorder %v3569_v38, %v3603_v31  ;;  %vm2332_vm10 = vcmp.eq.s32.totalorder %v3552_v23, %v3603_v31  ;;  %vm2328_vm6 = vcmp.eq.s32.totalorder %v3580_v37, %v3603_v31  ;;  %vm2326_vm4 = vcmp.eq.s32.totalorder %v3594_v52, %v3603_v31 }
 0xa21   : > { %2770 = vmatmul.msk.f32.gmra.mxu1 %vm860_vm0, %v2376_v55  ;;  %v2317_v55 = vsel %vm2299_vm15, %v3586_v48, 0.0  ;;  %vm2289_vm15 = vcmp.eq.s32.totalorder %v3624_v7, %v3567_v36 }
 0xa23   : > { %2775 = vmatmul.msk.f32.gmra.mxu2 %vm860_vm0, %v2373_v50  ;;  %v2166_v50 = vsub.f32 1.0, %v2164_v42 }
 0xa25   : > { %v2202_v4 = vsel %vm2200_vm8, %v2166_v50, 0.0 }
 0xa26   : > { %v3630_v10 = vperm.slane %v2202_v4, 0 }
 0xa28   : > { %v2312_v27 = vsel %vm2294_vm7, %v3630_v10, 0.0  ;;  %v2308_v29 = vsel %vm2290_vm2, %v3630_v10, 0.0  ;;  %v2310_v35 = vsel %vm2292_vm1, %v3630_v10, 0.0  ;;  %vm2291_vm7 = vcmp.eq.s32.totalorder %v3594_v52, %v3567_v36 }
 0xa29   : > { %2771 = vmatmul.msk.f32.gmra.mxu1 %vm860_vm0, %v2377_v57 }
 0xa2b   : > { %2776 = vmatmul.msk.f32.gmra.mxu2 %vm860_vm0, %v2374_v54  ;;  %vm2814_vm0 = vcmp.lt.s32.totalorder %v2221_v11, 0  ;;  %v3632_v11 = vpop.permute.xlu1 %2262 }
 0xa2c   : > { %v2817_v16 = vsel %vm2814_vm0, %v2815_v59, %v2816_v14  ;;  %vm3590_vm0 = vmand %vm2210_vm12, %vm2212_vm13  ;;  %vm2288_vm12 = vcmp.eq.s32.totalorder %v3624_v7, %v3611_v60  ;;  %vm2330_vm13 = vcmp.eq.s32.totalorder %v3556_v28, %v3603_v31  ;;  %v3642_v14 = vpop.permute.xlu2 %2259  ;;  %vm2286_vm5 = vcmp.eq.s32.totalorder %v3632_v11, %v3611_v60 }
 0xa2d   : > { %v2818_v22 = vcvt.f32.s32 %v2817_v16  ;;  %v2216_v57 = vsel %vm3590_vm0, %v2164_v42, 0.0  ;;  %vm2320_vm0 = vcmp.eq.s32.totalorder %v3642_v14, %v3603_v31  ;;  %vm2287_vm8 = vcmp.eq.s32.totalorder %v3632_v11, %v3567_v36 }
 0xa2e   : > { %v3622_v6 = vperm.slane %v2216_v57, 0  ;;  %vm3857_vm1 = vcmp.eq.s32.totalorder %v3642_v14, %v3611_v60 }
 0xa2f   : > { %v3563_v33 = vperm.slane %v2818_v22, 0 }
 0xa30   : > { %v2352_v59 = vsel %vm2334_vm9, %v3622_v6, 0.0  ;;  %v2350_v58 = vsel %vm2332_vm10, %v3622_v6, 0.0  ;;  %vm2322_vm9 = vcmp.eq.s32.totalorder %v3632_v11, %v3603_v31 }
 0xa31   : > { %vm2335_vm11 = vcmp.eq.s32.totalorder %v3569_v38, %v3563_v33  ;;  %vm2333_vm14 = vcmp.eq.s32.totalorder %v3552_v23, %v3563_v33  ;;  %vm2331_vm3 = vcmp.eq.s32.totalorder %v3556_v28, %v3563_v33  ;;  %vm2329_vm10 = vcmp.eq.s32.totalorder %v3580_v37, %v3563_v33 }
 0xa32   : > { %v2353_v49 = vsel %vm2335_vm11, %v3578_v46, 0.0  ;;  %v2351_v54 = vsel %vm2333_vm14, %v3578_v46, 0.0  ;;  %v2349_v61 = vsel %vm2331_vm3, %v3578_v46, 0.0  ;;  %vm2298_vm11 = vcmp.eq.s32.totalorder %v3569_v38, %v3611_v60 }
 0xa33   : > { %v2369_v56 = vadd.f32 %v2353_v49, %v2317_v55  ;;  %v2367_v1 = vadd.f32 %v2351_v54, %v2315_v62  ;;  %v2365_v8 = vadd.f32 %v2349_v61, %v2313_v5  ;;  %vm2296_vm14 = vcmp.eq.s32.totalorder %v3552_v23, %v3611_v60 }
 0xa34   : > { %v2316_v16 = vsel %vm2298_vm11, %v3630_v10, 0.0  ;;  %vm2324_vm3 = vcmp.eq.s32.totalorder %v3624_v7, %v3603_v31  ;;  %v2314_v21 = vsel %vm2296_vm14, %v3630_v10, 0.0  ;;  %v2346_v23 = vsel %vm2328_vm6, %v3622_v6, 0.0 }
 0xa35   : > { %v2368_v18 = vadd.f32 %v2352_v59, %v2316_v16  ;;  %v2366_v25 = vadd.f32 %v2350_v58, %v2314_v21  ;;  %vm2327_vm14 = vcmp.eq.s32.totalorder %v3594_v52, %v3563_v33  ;;  %vm2293_vm11 = vcmp.eq.s32.totalorder %v3580_v37, %v3567_v36 }
 0xa36   : > { %v2347_v34 = vsel %vm2329_vm10, %v3578_v46, 0.0  ;;  %vm2325_vm6 = vcmp.eq.s32.totalorder %v3624_v7, %v3563_v33  ;;  %v2344_v28 = vsel %vm2326_vm4, %v3622_v6, 0.0  ;;  %v2362_v38 = vadd.f32 %v2346_v23, %v2310_v35 }
 0xa37   : > { %v2311_v42 = vsel %vm2293_vm11, %v3586_v48, 0.0  ;;  %vm2321_vm2 = vcmp.eq.s32.totalorder %v3642_v14, %v3563_v33  ;;  %vm2323_vm10 = vcmp.eq.s32.totalorder %v3632_v11, %v3563_v33  ;;  %v2342_v43 = vsel %vm2324_vm3, %v3622_v6, 0.0 }
 0xa38   : > { %v2363_v45 = vadd.f32 %v2347_v34, %v2311_v42  ;;  %v2360_v37 = vadd.f32 %v2344_v28, %v2308_v29  ;;  %v2343_v47 = vsel %vm2325_vm6, %v3578_v46, 0.0  ;;  %v2309_v49 = vsel %vm2291_vm7, %v3586_v48, 0.0 }
 0xa39   : > { %v2340_v51 = vsel %vm2322_vm9, %v3622_v6, 0.0  ;;  %v2306_v52 = vsel %vm2288_vm12, %v3630_v10, 0.0  ;;  %v2341_v57 = vsel %vm2323_vm10, %v3578_v46, 0.0  ;;  %v2307_v62 = vsel %vm2289_vm15, %v3586_v48, 0.0 }
 0xa3a   : > { %v2358_v61 = vadd.f32 %v2342_v43, %v2306_v52  ;;  %v2305_v31 = vsel %vm2287_vm8, %v3586_v48, 0.0  ;;  %vm3858_vm4 = vcmask 523264   ;;  %vm3860_vm15 = vcmask 1043456  }
 0xa3b   : > { %v2357_v7 = vadd.f32 %v2341_v57, %v2305_v31  ;;  %vm3859_vm12 = vmmov %vm3858_vm4 }
 0xa86   : > { %v3546_v13 = vpop.f32.mrf.mxu1  ;;  %v3596_v53 = vpop.f32.mrf.mxu0 }
 0xa8e   : > { %v3548_v19 = vpop.f32.mrf.mxu2  ;;  %v3550_v20 = vpop.f32.mrf.mxu3 }
 0xa8f   : > { %v3554_v24 = vpop.f32.mrf.mxu1  ;;  %v2495_v12 = vmul.f32 %v3550_v20, %v2365_v8  ;;  %v3648_v15 = vpop.f32.mrf.mxu0  ;;  %v2348_v20 = vsel %vm2330_vm13, %v3622_v6, 0.0  ;;  %vm2285_vm13 = vcmp.eq.s32.totalorder %v3642_v14, %v3567_v36 }
 0xa90   : > { %v2364_v30 = vadd.f32 %v2348_v20, %v2312_v27  ;;  %v2303_v33 = vsel %vm2285_vm13, %v3586_v48, 0.0 }
 0xa96   : > { %v3571_v40 = vpop.f32.mrf.mxu2  ;;  %v2478_v41 = vpop.f32.mrf.mxu3 }
 0xa97   : > { %v3574_v44 = vpop.f32.mrf.mxu1  ;;  %v2497_v9 = vmul.f32 %v2478_v41, %v2367_v1  ;;  %v2345_v41 = vsel %vm2327_vm14, %v3578_v46, 0.0  ;;  %v2425_v54 = vpop.f32.mrf.mxu0  ;;  %v2304_v1 = vsel %vm2286_vm5, %v3630_v10, 0.0 }
 0xa98   : > { %v2494_v39 = vmul.f32 %v3574_v44, %v2364_v30  ;;  %v2492_v44 = vmul.f32 %v3554_v24, %v2362_v38  ;;  %v2361_v55 = vadd.f32 %v2345_v41, %v2309_v49  ;;  %v2490_v24 = vmul.f32 %v3546_v13, %v2360_v37 }
 0xa99   : > { %v2359_v13 = vadd.f32 %v2343_v47, %v2307_v62  ;;  %v2356_v4 = vadd.f32 %v2340_v51, %v2304_v1  ;;  %v2488_v5 = vmul.f32 %v2425_v54, %v2358_v61 }
 0xa9e   : > { %v3615_v63 = vpop.f32.mrf.mxu2  ;;  %v2481_v0 = vpop.f32.mrf.mxu3 }
 0xa9f   : > { %v2499_v2 = vmul.f32 %v2481_v0, %v2369_v56  ;;  %v2437_v3 = vpop.f32.mrf.mxu1  ;;  %v2338_v0 = vsel %vm2320_vm0, %v3622_v6, 0.0  ;;  %v2302_v6 = vsel %vm3857_vm1, %v3630_v10, 0.0  ;;  %v2489_v8 = vmul.f32 %v3615_v63, %v2359_v13  ;;  %v850_v63 = vld [vmem:[%s3803_s26] sm:$0xf] }
 0xaa0   : > { %v2496_v32 = vmul.f32 %v2437_v3, %v2366_v25  ;;  %v2339_v3 = vsel %vm2321_vm2, %v3578_v46, 0.0  ;;  %v2486_v46 = vmul.f32 %v3648_v15, %v2356_v4 }
 0xaa1   : > { %2531 = vmatpush.msra.mxu0 %v2499_v2  ;;  %v2355_v11 = vadd.f32 %v2339_v3, %v2303_v33 }
 0xaa3   : > { %2532 = vmatpush.msra.mxu0 %v2497_v9  ;;  %v2354_v9 = vadd.f32 %v2338_v0, %v2302_v6  ;;  %v2485_v10 = vmul.f32 %v3548_v19, %v2355_v11 }
 0xaa5   : > { %2533 = vmatpush.msra.mxu0 %v2495_v12  ;;  %v2487_v12 = vmul.f32 %v3571_v40, %v2357_v7  ;;  %v2484_v60 = vmul.f32 %v3596_v53, %v2354_v9 }
 0xaa6   : > { %v2469_v17 = vpop.f32.mrf.mxu2 }
 0xaa7   : > { %v2440_v22 = vpop.f32.mrf.mxu1  ;;  %v2491_v2 = vmul.f32 %v2469_v17, %v2361_v55 }
 0xaa8   : > { %v2498_v26 = vmul.f32 %v2440_v22, %v2368_v18 }
 0xaaa   : > { %2511 = vmatpush.msrb.mxu3 %v2498_v26 }
 0xaac   : > { %2512 = vmatpush.msrb.mxu3 %v2496_v32 }
 0xaae   : > { %v2472_v50 = vpop.f32.mrf.mxu2  ;;  %2513 = vmatpush.msrb.mxu3 %v2494_v39 }
 0xaaf   : > { %v2493_v56 = vmul.f32 %v2472_v50, %v2363_v45 }
 0xab0   : > { %2514 = vmatpush.msrb.mxu3 %v2492_v44 }
 0xab1   : > { %2534 = vmatpush.msra.mxu0 %v2493_v56 }
 0xab2   : > { %2515 = vmatpush.msrb.mxu3 %v2490_v24 }
 0xab3   : > { %2535 = vmatpush.msra.mxu0 %v2491_v2 }
 0xab4   : > { %2516 = vmatpush.msrb.mxu3 %v2488_v5 }
 0xab5   : > { %2536 = vmatpush.msra.mxu0 %v2489_v8 }
 0xab6   : > { %2517 = vmatpush.msrb.mxu3 %v2486_v46 }
 0xab7   : > { %2537 = vmatpush.msra.mxu0 %v2487_v12 }
 0xab8   : > { %2518 = vmatpush.msrb.mxu3 %v2484_v60 }
 0xab9   : > { %2538 = vmatpush.msra.mxu0 %v2485_v10  ;;  %2780 = vmatmul.msk.f32.vlgmr.msrb.gmra.mxu3 %vm3858_vm4, %v850_v63 }
 0xaba   : > { %2781 = vmatmul.msk.f32.vlgmr.msra.gmra.mxu0 %vm3859_vm12, %v850_v63 }
 0xb37   : > { %v2540_v36 = vpop.f32.mrf.mxu0 }
 0xb38   : > { %v2545_v40 = vrot.slane %v2540_v36, 4 }
 0xb3c   : > { %v2520_v48 = vpop.f32.mrf.mxu3 }
 0xb3d   : > { %v2546_v53 = vsel %vm3860_vm15, %v2520_v48, %v2545_v40 }
 0xb3e   : > { %2548 = vst [vmem:[%s838_s1] sm:$0xff] %v2546_v53 }
 0xb3f PF: > { %s3861_s28 = sld [smem:[#allocation2_spill]] }
 0xb45   : > { %s37_s7 = sadd.s32 1, %s3861_s28  }
 0xb46   : > { %p34_p4 = scmp.ge.s32.totalorder %s37_s7, 4  }
 0xb48   :  { %36 = sbr.rel (!%p34_p4) target bundleno = 13 (0xd), region = 190 }

</bundles_post_ra>
